<compile_context>
chip_gen: v6e
topology: v6e:2x2x1
jax: 0.10.0
libtpu: 0.0.40
codegen_flags: <defaults>
</compile_context>

<pallas_src>
import jax
import jax.numpy as jnp
from jax import lax
from jax.experimental import pallas as pl
from jax.experimental.pallas import tpu as pltpu

# ---- small synthetic BERT config ------------------------------------------
N, L = 2, 8                 # batch, sequence length
H = 32                      # hidden size
NUM_LAYERS = 2
NUM_HEADS = 2
HEAD_DIM = H // NUM_HEADS
INTER = 64                  # FFN intermediate size
VOCAB = 50
TYPE_VOCAB = 2
MAX_POS = 16
LN_EPS = 1e-12              # BERT LayerNorm eps


def _layer_norm(x, gamma, beta):
    mean = jnp.mean(x, axis=-1, keepdims=True)
    var = jnp.mean((x - mean) ** 2, axis=-1, keepdims=True)
    inv = lax.rsqrt(var + LN_EPS)
    return (x - mean) * inv * gamma + beta


# ---- fused Pallas kernel: embedding LN + full encoder stack -----------------
def bert_forward_kernel(mask_ref, emb_ref,
                        eg_ref, eb_ref,
                        wq_ref, bq_ref, wk_ref, bk_ref, wv_ref, bv_ref,
                        wo_ref, bo_ref, g1_ref, b1_ref,
                        w1_ref, c1_ref, w2_ref, c2_ref, g2_ref, b2_ref,
                        o_ref):
    # additive key mask computed in-kernel from the raw int32 attention mask row
    bias = (1.0 - mask_ref[...].astype(jnp.float32)) * -10000.0        # (1, L)

    h = _layer_norm(emb_ref[...], eg_ref[...], eb_ref[...])            # (L, H) f32

    for li in range(NUM_LAYERS):                                       # static loop over layers
        h_bf = h.astype(jnp.bfloat16)
        attn = jnp.zeros((L, H), jnp.float32)
        for hd in range(NUM_HEADS):                                    # static loop over heads
            i = li * NUM_HEADS + hd
            # per-head weight slabs selected on the leading axis -> no lane slices
            qh = jnp.dot(h_bf, wq_ref[i], preferred_element_type=jnp.float32) + bq_ref[i]
            kh = jnp.dot(h_bf, wk_ref[i], preferred_element_type=jnp.float32) + bk_ref[i]
            vh = jnp.dot(h_bf, wv_ref[i], preferred_element_type=jnp.float32) + bv_ref[i]
            # scores = (q/sqrt(d)) @ k^T + mask (scale already folded into Wq/bq)
            s = lax.dot_general(qh.astype(jnp.bfloat16), kh.astype(jnp.bfloat16),
                                dimension_numbers=(((1,), (1,)), ((), ())),
                                preferred_element_type=jnp.float32) + bias   # (L, L)
            s = s - jnp.max(s, axis=-1, keepdims=True)
            p = jnp.exp(s)
            p = p * pl.reciprocal(jnp.sum(p, axis=-1, keepdims=True), approx=True)
            ctx = jnp.dot(p.astype(jnp.bfloat16), vh.astype(jnp.bfloat16),
                          preferred_element_type=jnp.float32)           # (L, HEAD_DIM)
            # head-concat followed by the output projection == sum over heads
            # of ctx_h @ Wo[rows of this head]  -> no in-kernel concat
            attn = attn + jnp.dot(ctx.astype(jnp.bfloat16), wo_ref[i],
                                  preferred_element_type=jnp.float32)
        attn = attn + bo_ref[li]

        h = _layer_norm(h + attn, g1_ref[li], b1_ref[li])

        ff = jnp.dot(h.astype(jnp.bfloat16), w1_ref[li],
                     preferred_element_type=jnp.float32) + c1_ref[li]
        # TODO(synk): HF BERT uses the exact erf-based GELU; tanh approximation used here.
        ff = jax.nn.gelu(ff, approximate=True)
        ff = jnp.dot(ff.astype(jnp.bfloat16), w2_ref[li],
                     preferred_element_type=jnp.float32) + c2_ref[li]

        h = _layer_norm(h + ff, g2_ref[li], b2_ref[li])

    o_ref[...] = h


# ---- wrappers ---------------------------------------------------------------
WEIGHT_KEYS = ("eg", "eb", "wq", "bq", "wk", "bk", "wv", "bv",
               "wo", "bo", "g1", "b1", "w1", "c1", "w2", "c2", "g2", "b2")


def _full_spec(shape):
    nd = len(shape)
    return pl.BlockSpec(shape, lambda n, _nd=nd: (0,) * _nd)


def bert_encoder_forward(emb, attention_mask, packed):
    weights = [packed[k] for k in WEIGHT_KEYS]
    in_specs = [pl.BlockSpec((None, 1, L), lambda n: (n, 0, 0)),       # int32 mask row
                pl.BlockSpec((None, L, H), lambda n: (n, 0, 0))]       # embeddings (batch squeezed)
    in_specs += [_full_spec(w.shape) for w in weights]                 # VMEM-resident weights
    return pl.pallas_call(
        bert_forward_kernel,
        out_shape=jax.ShapeDtypeStruct((N, L, H), jnp.float32),
        grid_spec=pltpu.PrefetchScalarGridSpec(
            num_scalar_prefetch=0,
            grid=(N,),
            in_specs=in_specs,
            out_specs=pl.BlockSpec((None, L, H), lambda n: (n, 0, 0)),
        ),
        compiler_params=pltpu.CompilerParams(
            dimension_semantics=("parallel",)),   # 2 grid steps -> both v7x TCs busy
    )(attention_mask.reshape(N, 1, L), emb, *weights)


def pack_params(params):
    """Stack per-layer weights, split attention weights per head onto a leading
    axis, fold 1/sqrt(HEAD_DIM) into Wq/bq, cast matmul weights to bf16
    (biases / LayerNorm params stay f32)."""
    layers = params["layers"]

    def stack(i):
        return jnp.stack([lyr[i] for lyr in layers], axis=0)

    wq, bq = stack(0), stack(1)
    wk, bk = stack(2), stack(3)
    wv, bv = stack(4), stack(5)
    wo, bo = stack(6), stack(7)
    g1, b1 = stack(8), stack(9)
    w1, c1 = stack(10), stack(11)
    w2, c2 = stack(12), stack(13)
    g2, b2 = stack(14), stack(15)

    def split_in(w):    # (NL, H, H) -> (NL*NH, H, HEAD_DIM): output columns per head
        return (w.reshape(NUM_LAYERS, H, NUM_HEADS, HEAD_DIM)
                 .transpose(0, 2, 1, 3)
                 .reshape(NUM_LAYERS * NUM_HEADS, H, HEAD_DIM))

    def split_bias(b):  # (NL, 1, H) -> (NL*NH, 1, HEAD_DIM)
        return (b.reshape(NUM_LAYERS, 1, NUM_HEADS, HEAD_DIM)
                 .transpose(0, 2, 1, 3)
                 .reshape(NUM_LAYERS * NUM_HEADS, 1, HEAD_DIM))

    def split_out(w):   # (NL, H, H) -> (NL*NH, HEAD_DIM, H): input rows per head
        return w.reshape(NUM_LAYERS * NUM_HEADS, HEAD_DIM, H)

    scale = 1.0 / (HEAD_DIM ** 0.5)
    bf16 = jnp.bfloat16
    return {
        "eg": params["emb_ln_g"], "eb": params["emb_ln_b"],
        "wq": (split_in(wq) * scale).astype(bf16), "bq": split_bias(bq) * scale,
        "wk": split_in(wk).astype(bf16), "bk": split_bias(bk),
        "wv": split_in(wv).astype(bf16), "bv": split_bias(bv),
        "wo": split_out(wo).astype(bf16), "bo": bo,
        "g1": g1, "b1": b1,
        "w1": w1.astype(bf16), "c1": c1,
        "w2": w2.astype(bf16), "c2": c2,
        "g2": g2, "b2": b2,
    }


def init_params(key):
    keys = iter(jax.random.split(key, 64))

    def nrm(shape):
        return (0.02 * jax.random.normal(next(keys), shape)).astype(jnp.float32)

    params = {
        "word_emb": nrm((VOCAB, H)),
        "pos_emb": nrm((MAX_POS, H)),
        "type_emb": nrm((TYPE_VOCAB, H)),
        "emb_ln_g": jnp.ones((1, H), jnp.float32),
        "emb_ln_b": jnp.zeros((1, H), jnp.float32),
        "layers": [],
        # W_hy (Linear(H, 1)) exists in __init__ but is unused by forward();
        # initialized here only for shape completeness.
        "W_hy_w": nrm((H, 1)),
        "W_hy_b": jnp.zeros((1,), jnp.float32),
    }
    for _ in range(NUM_LAYERS):
        layer = (
            nrm((H, H)), jnp.zeros((1, H), jnp.float32),          # Wq, bq
            nrm((H, H)), jnp.zeros((1, H), jnp.float32),          # Wk, bk
            nrm((H, H)), jnp.zeros((1, H), jnp.float32),          # Wv, bv
            nrm((H, H)), jnp.zeros((1, H), jnp.float32),          # Wo, bo
            jnp.ones((1, H), jnp.float32), jnp.zeros((1, H), jnp.float32),   # LN1
            nrm((H, INTER)), jnp.zeros((1, INTER), jnp.float32),  # FFN W1, b1
            nrm((INTER, H)), jnp.zeros((1, H), jnp.float32),      # FFN W2, b2
            jnp.ones((1, H), jnp.float32), jnp.zeros((1, H), jnp.float32),   # LN2
        )
        params["layers"].append(layer)
    return params


def sentiment_classifier_forward(X, params, packed):
    """X: (N, 3, L) int32  ->  H_all: (N, L, H) float32"""
    input_ids = X[:, 0]
    token_type_ids = X[:, 1]
    attention_mask = X[:, 2]                  # raw int32; additive bias built in-kernel

    # Embedding gathers are glue (plain JAX); everything else runs in one Pallas call.
    emb = (jnp.take(params["word_emb"], input_ids, axis=0)
           + params["pos_emb"][None, :L, :]
           + jnp.take(params["type_emb"], token_type_ids, axis=0)).astype(jnp.float32)
    return bert_encoder_forward(emb, attention_mask, packed)


if __name__ == "__main__":
    key = jax.random.PRNGKey(0)
    k_ids, k_params = jax.random.split(key)

    input_ids = jax.random.randint(k_ids, (N, L), 0, VOCAB, dtype=jnp.int32)
    token_type_ids = jnp.zeros((N, L), jnp.int32).at[:, L // 2:].set(1)
    lengths = jnp.array([L, L - 3])
    attention_mask = (jnp.arange(L)[None, :] < lengths[:, None]).astype(jnp.int32)
    X = jnp.stack([input_ids, token_type_ids, attention_mask], axis=1)   # (N, 3, L)

    params = init_params(k_params)
    packed = pack_params(params)
    H_all = sentiment_classifier_forward(X, params, packed)
    jax.block_until_ready(H_all)

    assert H_all.shape == (N, L, H), H_all.shape
    assert bool(jnp.all(jnp.isfinite(H_all)))
    print("KERNEL_OK")
</pallas_src>

<mosaic_0001>
module attributes {stable_mosaic.version = 11 : i64} {
  func.func @bert_forward_kernel(%arg0: i32, %arg1: memref<1x1x8xi32, #tpu.memory_space<vmem>>, %arg2: memref<1x8x32xf32, #tpu.memory_space<vmem>>, %arg3: memref<1x32xf32, #tpu.memory_space<vmem>>, %arg4: memref<1x32xf32, #tpu.memory_space<vmem>>, %arg5: memref<4x32x16xbf16, #tpu.memory_space<vmem>>, %arg6: memref<4x1x16xf32, #tpu.memory_space<vmem>>, %arg7: memref<4x32x16xbf16, #tpu.memory_space<vmem>>, %arg8: memref<4x1x16xf32, #tpu.memory_space<vmem>>, %arg9: memref<4x32x16xbf16, #tpu.memory_space<vmem>>, %arg10: memref<4x1x16xf32, #tpu.memory_space<vmem>>, %arg11: memref<4x16x32xbf16, #tpu.memory_space<vmem>>, %arg12: memref<2x1x32xf32, #tpu.memory_space<vmem>>, %arg13: memref<2x1x32xf32, #tpu.memory_space<vmem>>, %arg14: memref<2x1x32xf32, #tpu.memory_space<vmem>>, %arg15: memref<2x32x64xbf16, #tpu.memory_space<vmem>>, %arg16: memref<2x1x64xf32, #tpu.memory_space<vmem>>, %arg17: memref<2x64x32xbf16, #tpu.memory_space<vmem>>, %arg18: memref<2x1x32xf32, #tpu.memory_space<vmem>>, %arg19: memref<2x1x32xf32, #tpu.memory_space<vmem>>, %arg20: memref<2x1x32xf32, #tpu.memory_space<vmem>>, %arg21: memref<1x8x32xf32, #tpu.memory_space<vmem>>) attributes {dimension_semantics = [#tpu.dimension_semantics<parallel>], iteration_bounds = array<i64: 2>, scalar_prefetch = 0 : i64, scratch_operands = 0 : i64, tpu.core_type = #tpu.core_type<tc>, window_params = [{transform_indices = @transform_0, window_bounds = array<i64: 1, 1, 8>}, {transform_indices = @transform_1, window_bounds = array<i64: 1, 8, 32>}, {pipeline_mode = #tpu.pipeline_mode<synchronous>, transform_indices = @transform_2, window_bounds = array<i64: 1, 32>}, {pipeline_mode = #tpu.pipeline_mode<synchronous>, transform_indices = @transform_3, window_bounds = array<i64: 1, 32>}, {pipeline_mode = #tpu.pipeline_mode<synchronous>, transform_indices = @transform_4, window_bounds = array<i64: 4, 32, 16>}, {pipeline_mode = #tpu.pipeline_mode<synchronous>, transform_indices = @transform_5, window_bounds = array<i64: 4, 1, 16>}, {pipeline_mode = #tpu.pipeline_mode<synchronous>, transform_indices = @transform_6, window_bounds = array<i64: 4, 32, 16>}, {pipeline_mode = #tpu.pipeline_mode<synchronous>, transform_indices = @transform_7, window_bounds = array<i64: 4, 1, 16>}, {pipeline_mode = #tpu.pipeline_mode<synchronous>, transform_indices = @transform_8, window_bounds = array<i64: 4, 32, 16>}, {pipeline_mode = #tpu.pipeline_mode<synchronous>, transform_indices = @transform_9, window_bounds = array<i64: 4, 1, 16>}, {pipeline_mode = #tpu.pipeline_mode<synchronous>, transform_indices = @transform_10, window_bounds = array<i64: 4, 16, 32>}, {pipeline_mode = #tpu.pipeline_mode<synchronous>, transform_indices = @transform_11, window_bounds = array<i64: 2, 1, 32>}, {pipeline_mode = #tpu.pipeline_mode<synchronous>, transform_indices = @transform_12, window_bounds = array<i64: 2, 1, 32>}, {pipeline_mode = #tpu.pipeline_mode<synchronous>, transform_indices = @transform_13, window_bounds = array<i64: 2, 1, 32>}, {pipeline_mode = #tpu.pipeline_mode<synchronous>, transform_indices = @transform_14, window_bounds = array<i64: 2, 32, 64>}, {pipeline_mode = #tpu.pipeline_mode<synchronous>, transform_indices = @transform_15, window_bounds = array<i64: 2, 1, 64>}, {pipeline_mode = #tpu.pipeline_mode<synchronous>, transform_indices = @transform_16, window_bounds = array<i64: 2, 64, 32>}, {pipeline_mode = #tpu.pipeline_mode<synchronous>, transform_indices = @transform_17, window_bounds = array<i64: 2, 1, 32>}, {pipeline_mode = #tpu.pipeline_mode<synchronous>, transform_indices = @transform_18, window_bounds = array<i64: 2, 1, 32>}, {pipeline_mode = #tpu.pipeline_mode<synchronous>, transform_indices = @transform_19, window_bounds = array<i64: 2, 1, 32>}, {transform_indices = @transform_20, window_bounds = array<i64: 1, 8, 32>}]} {
    %c0 = arith.constant 0 : index
    %c0_0 = arith.constant 0 : index
    %c0_1 = arith.constant 0 : index
    %0 = vector.load %arg1[%c0, %c0_0, %c0_1] : memref<1x1x8xi32, #tpu.memory_space<vmem>>, vector<1x1x8xi32>
    %1 = vector.shape_cast %0 : vector<1x1x8xi32> to vector<1x8xi32>
    %2 = arith.sitofp %1 : vector<1x8xi32> to vector<1x8xf32>
    %cst = arith.constant 1.000000e+00 : f32
    %3 = vector.broadcast %cst : f32 to vector<1x8xf32>
    %4 = arith.subf %3, %2 : vector<1x8xf32>
    %cst_2 = arith.constant -1.000000e+04 : f32
    %5 = vector.broadcast %cst_2 : f32 to vector<1x8xf32>
    %6 = arith.mulf %4, %5 : vector<1x8xf32>
    %c0_3 = arith.constant 0 : index
    %c0_4 = arith.constant 0 : index
    %c0_5 = arith.constant 0 : index
    %7 = vector.load %arg2[%c0_3, %c0_4, %c0_5] : memref<1x8x32xf32, #tpu.memory_space<vmem>>, vector<1x8x32xf32>
    %8 = vector.shape_cast %7 : vector<1x8x32xf32> to vector<8x32xf32>
    %c0_6 = arith.constant 0 : index
    %c0_7 = arith.constant 0 : index
    %9 = vector.load %arg3[%c0_6, %c0_7] : memref<1x32xf32, #tpu.memory_space<vmem>>, vector<1x32xf32>
    %c0_8 = arith.constant 0 : index
    %c0_9 = arith.constant 0 : index
    %10 = vector.load %arg4[%c0_8, %c0_9] : memref<1x32xf32, #tpu.memory_space<vmem>>, vector<1x32xf32>
    %cst_10 = arith.constant dense<0.000000e+00> : vector<8xf32>
    %11 = vector.multi_reduction <add>, %8, %cst_10 [1] : vector<8x32xf32> to vector<8xf32>
    %12 = vector.shape_cast %11 : vector<8xf32> to vector<8x1xf32>
    %cst_11 = arith.constant 3.200000e+01 : f32
    %13 = vector.broadcast %cst_11 : f32 to vector<8x1xf32>
    %14 = arith.divf %12, %13 : vector<8x1xf32>
    %15 = vector.broadcast %14 : vector<8x1xf32> to vector<8x32xf32>
    %16 = arith.subf %8, %15 : vector<8x32xf32>
    %17 = arith.mulf %16, %16 : vector<8x32xf32>
    %cst_12 = arith.constant dense<0.000000e+00> : vector<8xf32>
    %18 = vector.multi_reduction <add>, %17, %cst_12 [1] : vector<8x32xf32> to vector<8xf32>
    %19 = vector.shape_cast %18 : vector<8xf32> to vector<8x1xf32>
    %cst_13 = arith.constant 3.200000e+01 : f32
    %20 = vector.broadcast %cst_13 : f32 to vector<8x1xf32>
    %21 = arith.divf %19, %20 : vector<8x1xf32>
    %cst_14 = arith.constant 9.99999996E-13 : f32
    %22 = vector.broadcast %cst_14 : f32 to vector<8x1xf32>
    %23 = arith.addf %21, %22 : vector<8x1xf32>
    %24 = math.rsqrt %23 : vector<8x1xf32>
    %25 = vector.broadcast %14 : vector<8x1xf32> to vector<8x32xf32>
    %26 = arith.subf %8, %25 : vector<8x32xf32>
    %27 = vector.broadcast %24 : vector<8x1xf32> to vector<8x32xf32>
    %28 = arith.mulf %26, %27 : vector<8x32xf32>
    %29 = vector.broadcast %9 : vector<1x32xf32> to vector<8x32xf32>
    %30 = arith.mulf %28, %29 : vector<8x32xf32>
    %31 = vector.broadcast %10 : vector<1x32xf32> to vector<8x32xf32>
    %32 = arith.addf %30, %31 : vector<8x32xf32>
    %33 = arith.truncf %32 : vector<8x32xf32> to vector<8x32xbf16>
    %cst_15 = arith.constant 0.000000e+00 : f32
    %34 = vector.broadcast %cst_15 : f32 to vector<8x32xf32>
    %c0_16 = arith.constant 0 : index
    %c0_17 = arith.constant 0 : index
    %c0_18 = arith.constant 0 : index
    %35 = vector.load %arg5[%c0_16, %c0_17, %c0_18] : memref<4x32x16xbf16, #tpu.memory_space<vmem>>, vector<1x32x16xbf16>
    %36 = vector.shape_cast %35 : vector<1x32x16xbf16> to vector<32x16xbf16>
    %cst_19 = arith.constant dense<0.000000e+00> : vector<8x16xf32>
    %37 = tpu.matmul %33, %36, %cst_19 {dimension_numbers = #tpu.dot_dimension_numbers<[1], [0], [0], [1], [0, 0, 1, 1], [], []>} : vector<8x32xbf16>, vector<32x16xbf16>, vector<8x16xf32> -> vector<8x16xf32>
    %c0_20 = arith.constant 0 : index
    %c0_21 = arith.constant 0 : index
    %c0_22 = arith.constant 0 : index
    %38 = vector.load %arg6[%c0_20, %c0_21, %c0_22] : memref<4x1x16xf32, #tpu.memory_space<vmem>>, vector<1x1x16xf32>
    %39 = vector.shape_cast %38 : vector<1x1x16xf32> to vector<1x16xf32>
    %40 = vector.broadcast %39 : vector<1x16xf32> to vector<8x16xf32>
    %41 = arith.addf %37, %40 : vector<8x16xf32>
    %c0_23 = arith.constant 0 : index
    %c0_24 = arith.constant 0 : index
    %c0_25 = arith.constant 0 : index
    %42 = vector.load %arg7[%c0_23, %c0_24, %c0_25] : memref<4x32x16xbf16, #tpu.memory_space<vmem>>, vector<1x32x16xbf16>
    %43 = vector.shape_cast %42 : vector<1x32x16xbf16> to vector<32x16xbf16>
    %cst_26 = arith.constant dense<0.000000e+00> : vector<8x16xf32>
    %44 = tpu.matmul %33, %43, %cst_26 {dimension_numbers = #tpu.dot_dimension_numbers<[1], [0], [0], [1], [0, 0, 1, 1], [], []>} : vector<8x32xbf16>, vector<32x16xbf16>, vector<8x16xf32> -> vector<8x16xf32>
    %c0_27 = arith.constant 0 : index
    %c0_28 = arith.constant 0 : index
    %c0_29 = arith.constant 0 : index
    %45 = vector.load %arg8[%c0_27, %c0_28, %c0_29] : memref<4x1x16xf32, #tpu.memory_space<vmem>>, vector<1x1x16xf32>
    %46 = vector.shape_cast %45 : vector<1x1x16xf32> to vector<1x16xf32>
    %47 = vector.broadcast %46 : vector<1x16xf32> to vector<8x16xf32>
    %48 = arith.addf %44, %47 : vector<8x16xf32>
    %c0_30 = arith.constant 0 : index
    %c0_31 = arith.constant 0 : index
    %c0_32 = arith.constant 0 : index
    %49 = vector.load %arg9[%c0_30, %c0_31, %c0_32] : memref<4x32x16xbf16, #tpu.memory_space<vmem>>, vector<1x32x16xbf16>
    %50 = vector.shape_cast %49 : vector<1x32x16xbf16> to vector<32x16xbf16>
    %cst_33 = arith.constant dense<0.000000e+00> : vector<8x16xf32>
    %51 = tpu.matmul %33, %50, %cst_33 {dimension_numbers = #tpu.dot_dimension_numbers<[1], [0], [0], [1], [0, 0, 1, 1], [], []>} : vector<8x32xbf16>, vector<32x16xbf16>, vector<8x16xf32> -> vector<8x16xf32>
    %c0_34 = arith.constant 0 : index
    %c0_35 = arith.constant 0 : index
    %c0_36 = arith.constant 0 : index
    %52 = vector.load %arg10[%c0_34, %c0_35, %c0_36] : memref<4x1x16xf32, #tpu.memory_space<vmem>>, vector<1x1x16xf32>
    %53 = vector.shape_cast %52 : vector<1x1x16xf32> to vector<1x16xf32>
    %54 = vector.broadcast %53 : vector<1x16xf32> to vector<8x16xf32>
    %55 = arith.addf %51, %54 : vector<8x16xf32>
    %56 = arith.truncf %41 : vector<8x16xf32> to vector<8x16xbf16>
    %57 = arith.truncf %48 : vector<8x16xf32> to vector<8x16xbf16>
    %cst_37 = arith.constant dense<0.000000e+00> : vector<8x8xf32>
    %58 = tpu.matmul %56, %57, %cst_37 {dimension_numbers = #tpu.dot_dimension_numbers<[1], [1], [0], [0], [0, 0, 1, 0], [], []>} : vector<8x16xbf16>, vector<8x16xbf16>, vector<8x8xf32> -> vector<8x8xf32>
    %59 = vector.broadcast %6 : vector<1x8xf32> to vector<8x8xf32>
    %60 = arith.addf %58, %59 : vector<8x8xf32>
    %cst_38 = arith.constant dense<0xFF800000> : vector<8xf32>
    %61 = vector.multi_reduction <maximumf>, %60, %cst_38 [1] : vector<8x8xf32> to vector<8xf32>
    %62 = vector.shape_cast %61 : vector<8xf32> to vector<8x1xf32>
    %63 = vector.broadcast %62 : vector<8x1xf32> to vector<8x8xf32>
    %64 = arith.subf %60, %63 : vector<8x8xf32>
    %65 = math.exp %64 : vector<8x8xf32>
    %cst_39 = arith.constant dense<0.000000e+00> : vector<8xf32>
    %66 = vector.multi_reduction <add>, %65, %cst_39 [1] : vector<8x8xf32> to vector<8xf32>
    %67 = vector.shape_cast %66 : vector<8xf32> to vector<8x1xf32>
    %68 = tpu.reciprocal %67 {approx = true} : vector<8x1xf32> -> vector<8x1xf32>
    %69 = vector.broadcast %68 : vector<8x1xf32> to vector<8x8xf32>
    %70 = arith.mulf %65, %69 : vector<8x8xf32>
    %71 = arith.truncf %70 : vector<8x8xf32> to vector<8x8xbf16>
    %72 = arith.truncf %55 : vector<8x16xf32> to vector<8x16xbf16>
    %cst_40 = arith.constant dense<0.000000e+00> : vector<8x16xf32>
    %73 = tpu.matmul %71, %72, %cst_40 {dimension_numbers = #tpu.dot_dimension_numbers<[1], [0], [0], [1], [0, 0, 1, 1], [], []>} : vector<8x8xbf16>, vector<8x16xbf16>, vector<8x16xf32> -> vector<8x16xf32>
    %74 = arith.truncf %73 : vector<8x16xf32> to vector<8x16xbf16>
    %c0_41 = arith.constant 0 : index
    %c0_42 = arith.constant 0 : index
    %c0_43 = arith.constant 0 : index
    %75 = vector.load %arg11[%c0_41, %c0_42, %c0_43] : memref<4x16x32xbf16, #tpu.memory_space<vmem>>, vector<1x16x32xbf16>
    %76 = vector.shape_cast %75 : vector<1x16x32xbf16> to vector<16x32xbf16>
    %cst_44 = arith.constant dense<0.000000e+00> : vector<8x32xf32>
    %77 = tpu.matmul %74, %76, %cst_44 {dimension_numbers = #tpu.dot_dimension_numbers<[1], [0], [0], [1], [0, 0, 1, 1], [], []>} : vector<8x16xbf16>, vector<16x32xbf16>, vector<8x32xf32> -> vector<8x32xf32>
    %78 = arith.addf %34, %77 : vector<8x32xf32>
    %c1 = arith.constant 1 : index
    %c0_45 = arith.constant 0 : index
    %c0_46 = arith.constant 0 : index
    %79 = vector.load %arg5[%c1, %c0_45, %c0_46] : memref<4x32x16xbf16, #tpu.memory_space<vmem>>, vector<1x32x16xbf16>
    %80 = vector.shape_cast %79 : vector<1x32x16xbf16> to vector<32x16xbf16>
    %cst_47 = arith.constant dense<0.000000e+00> : vector<8x16xf32>
    %81 = tpu.matmul %33, %80, %cst_47 {dimension_numbers = #tpu.dot_dimension_numbers<[1], [0], [0], [1], [0, 0, 1, 1], [], []>} : vector<8x32xbf16>, vector<32x16xbf16>, vector<8x16xf32> -> vector<8x16xf32>
    %c1_48 = arith.constant 1 : index
    %c0_49 = arith.constant 0 : index
    %c0_50 = arith.constant 0 : index
    %82 = vector.load %arg6[%c1_48, %c0_49, %c0_50] : memref<4x1x16xf32, #tpu.memory_space<vmem>>, vector<1x1x16xf32>
    %83 = vector.shape_cast %82 : vector<1x1x16xf32> to vector<1x16xf32>
    %84 = vector.broadcast %83 : vector<1x16xf32> to vector<8x16xf32>
    %85 = arith.addf %81, %84 : vector<8x16xf32>
    %c1_51 = arith.constant 1 : index
    %c0_52 = arith.constant 0 : index
    %c0_53 = arith.constant 0 : index
    %86 = vector.load %arg7[%c1_51, %c0_52, %c0_53] : memref<4x32x16xbf16, #tpu.memory_space<vmem>>, vector<1x32x16xbf16>
    %87 = vector.shape_cast %86 : vector<1x32x16xbf16> to vector<32x16xbf16>
    %cst_54 = arith.constant dense<0.000000e+00> : vector<8x16xf32>
    %88 = tpu.matmul %33, %87, %cst_54 {dimension_numbers = #tpu.dot_dimension_numbers<[1], [0], [0], [1], [0, 0, 1, 1], [], []>} : vector<8x32xbf16>, vector<32x16xbf16>, vector<8x16xf32> -> vector<8x16xf32>
    %c1_55 = arith.constant 1 : index
    %c0_56 = arith.constant 0 : index
    %c0_57 = arith.constant 0 : index
    %89 = vector.load %arg8[%c1_55, %c0_56, %c0_57] : memref<4x1x16xf32, #tpu.memory_space<vmem>>, vector<1x1x16xf32>
    %90 = vector.shape_cast %89 : vector<1x1x16xf32> to vector<1x16xf32>
    %91 = vector.broadcast %90 : vector<1x16xf32> to vector<8x16xf32>
    %92 = arith.addf %88, %91 : vector<8x16xf32>
    %c1_58 = arith.constant 1 : index
    %c0_59 = arith.constant 0 : index
    %c0_60 = arith.constant 0 : index
    %93 = vector.load %arg9[%c1_58, %c0_59, %c0_60] : memref<4x32x16xbf16, #tpu.memory_space<vmem>>, vector<1x32x16xbf16>
    %94 = vector.shape_cast %93 : vector<1x32x16xbf16> to vector<32x16xbf16>
    %cst_61 = arith.constant dense<0.000000e+00> : vector<8x16xf32>
    %95 = tpu.matmul %33, %94, %cst_61 {dimension_numbers = #tpu.dot_dimension_numbers<[1], [0], [0], [1], [0, 0, 1, 1], [], []>} : vector<8x32xbf16>, vector<32x16xbf16>, vector<8x16xf32> -> vector<8x16xf32>
    %c1_62 = arith.constant 1 : index
    %c0_63 = arith.constant 0 : index
    %c0_64 = arith.constant 0 : index
    %96 = vector.load %arg10[%c1_62, %c0_63, %c0_64] : memref<4x1x16xf32, #tpu.memory_space<vmem>>, vector<1x1x16xf32>
    %97 = vector.shape_cast %96 : vector<1x1x16xf32> to vector<1x16xf32>
    %98 = vector.broadcast %97 : vector<1x16xf32> to vector<8x16xf32>
    %99 = arith.addf %95, %98 : vector<8x16xf32>
    %100 = arith.truncf %85 : vector<8x16xf32> to vector<8x16xbf16>
    %101 = arith.truncf %92 : vector<8x16xf32> to vector<8x16xbf16>
    %cst_65 = arith.constant dense<0.000000e+00> : vector<8x8xf32>
    %102 = tpu.matmul %100, %101, %cst_65 {dimension_numbers = #tpu.dot_dimension_numbers<[1], [1], [0], [0], [0, 0, 1, 0], [], []>} : vector<8x16xbf16>, vector<8x16xbf16>, vector<8x8xf32> -> vector<8x8xf32>
    %103 = vector.broadcast %6 : vector<1x8xf32> to vector<8x8xf32>
    %104 = arith.addf %102, %103 : vector<8x8xf32>
    %cst_66 = arith.constant dense<0xFF800000> : vector<8xf32>
    %105 = vector.multi_reduction <maximumf>, %104, %cst_66 [1] : vector<8x8xf32> to vector<8xf32>
    %106 = vector.shape_cast %105 : vector<8xf32> to vector<8x1xf32>
    %107 = vector.broadcast %106 : vector<8x1xf32> to vector<8x8xf32>
    %108 = arith.subf %104, %107 : vector<8x8xf32>
    %109 = math.exp %108 : vector<8x8xf32>
    %cst_67 = arith.constant dense<0.000000e+00> : vector<8xf32>
    %110 = vector.multi_reduction <add>, %109, %cst_67 [1] : vector<8x8xf32> to vector<8xf32>
    %111 = vector.shape_cast %110 : vector<8xf32> to vector<8x1xf32>
    %112 = tpu.reciprocal %111 {approx = true} : vector<8x1xf32> -> vector<8x1xf32>
    %113 = vector.broadcast %112 : vector<8x1xf32> to vector<8x8xf32>
    %114 = arith.mulf %109, %113 : vector<8x8xf32>
    %115 = arith.truncf %114 : vector<8x8xf32> to vector<8x8xbf16>
    %116 = arith.truncf %99 : vector<8x16xf32> to vector<8x16xbf16>
    %cst_68 = arith.constant dense<0.000000e+00> : vector<8x16xf32>
    %117 = tpu.matmul %115, %116, %cst_68 {dimension_numbers = #tpu.dot_dimension_numbers<[1], [0], [0], [1], [0, 0, 1, 1], [], []>} : vector<8x8xbf16>, vector<8x16xbf16>, vector<8x16xf32> -> vector<8x16xf32>
    %118 = arith.truncf %117 : vector<8x16xf32> to vector<8x16xbf16>
    %c1_69 = arith.constant 1 : index
    %c0_70 = arith.constant 0 : index
    %c0_71 = arith.constant 0 : index
    %119 = vector.load %arg11[%c1_69, %c0_70, %c0_71] : memref<4x16x32xbf16, #tpu.memory_space<vmem>>, vector<1x16x32xbf16>
    %120 = vector.shape_cast %119 : vector<1x16x32xbf16> to vector<16x32xbf16>
    %cst_72 = arith.constant dense<0.000000e+00> : vector<8x32xf32>
    %121 = tpu.matmul %118, %120, %cst_72 {dimension_numbers = #tpu.dot_dimension_numbers<[1], [0], [0], [1], [0, 0, 1, 1], [], []>} : vector<8x16xbf16>, vector<16x32xbf16>, vector<8x32xf32> -> vector<8x32xf32>
    %122 = arith.addf %78, %121 : vector<8x32xf32>
    %c0_73 = arith.constant 0 : index
    %c0_74 = arith.constant 0 : index
    %c0_75 = arith.constant 0 : index
    %123 = vector.load %arg12[%c0_73, %c0_74, %c0_75] : memref<2x1x32xf32, #tpu.memory_space<vmem>>, vector<1x1x32xf32>
    %124 = vector.shape_cast %123 : vector<1x1x32xf32> to vector<1x32xf32>
    %125 = vector.broadcast %124 : vector<1x32xf32> to vector<8x32xf32>
    %126 = arith.addf %122, %125 : vector<8x32xf32>
    %127 = arith.addf %32, %126 : vector<8x32xf32>
    %c0_76 = arith.constant 0 : index
    %c0_77 = arith.constant 0 : index
    %c0_78 = arith.constant 0 : index
    %128 = vector.load %arg13[%c0_76, %c0_77, %c0_78] : memref<2x1x32xf32, #tpu.memory_space<vmem>>, vector<1x1x32xf32>
    %129 = vector.shape_cast %128 : vector<1x1x32xf32> to vector<1x32xf32>
    %c0_79 = arith.constant 0 : index
    %c0_80 = arith.constant 0 : index
    %c0_81 = arith.constant 0 : index
    %130 = vector.load %arg14[%c0_79, %c0_80, %c0_81] : memref<2x1x32xf32, #tpu.memory_space<vmem>>, vector<1x1x32xf32>
    %131 = vector.shape_cast %130 : vector<1x1x32xf32> to vector<1x32xf32>
    %cst_82 = arith.constant dense<0.000000e+00> : vector<8xf32>
    %132 = vector.multi_reduction <add>, %127, %cst_82 [1] : vector<8x32xf32> to vector<8xf32>
    %133 = vector.shape_cast %132 : vector<8xf32> to vector<8x1xf32>
    %cst_83 = arith.constant 3.200000e+01 : f32
    %134 = vector.broadcast %cst_83 : f32 to vector<8x1xf32>
    %135 = arith.divf %133, %134 : vector<8x1xf32>
    %136 = vector.broadcast %135 : vector<8x1xf32> to vector<8x32xf32>
    %137 = arith.subf %127, %136 : vector<8x32xf32>
    %138 = arith.mulf %137, %137 : vector<8x32xf32>
    %cst_84 = arith.constant dense<0.000000e+00> : vector<8xf32>
    %139 = vector.multi_reduction <add>, %138, %cst_84 [1] : vector<8x32xf32> to vector<8xf32>
    %140 = vector.shape_cast %139 : vector<8xf32> to vector<8x1xf32>
    %cst_85 = arith.constant 3.200000e+01 : f32
    %141 = vector.broadcast %cst_85 : f32 to vector<8x1xf32>
    %142 = arith.divf %140, %141 : vector<8x1xf32>
    %cst_86 = arith.constant 9.99999996E-13 : f32
    %143 = vector.broadcast %cst_86 : f32 to vector<8x1xf32>
    %144 = arith.addf %142, %143 : vector<8x1xf32>
    %145 = math.rsqrt %144 : vector<8x1xf32>
    %146 = vector.broadcast %135 : vector<8x1xf32> to vector<8x32xf32>
    %147 = arith.subf %127, %146 : vector<8x32xf32>
    %148 = vector.broadcast %145 : vector<8x1xf32> to vector<8x32xf32>
    %149 = arith.mulf %147, %148 : vector<8x32xf32>
    %150 = vector.broadcast %129 : vector<1x32xf32> to vector<8x32xf32>
    %151 = arith.mulf %149, %150 : vector<8x32xf32>
    %152 = vector.broadcast %131 : vector<1x32xf32> to vector<8x32xf32>
    %153 = arith.addf %151, %152 : vector<8x32xf32>
    %154 = arith.truncf %153 : vector<8x32xf32> to vector<8x32xbf16>
    %c0_87 = arith.constant 0 : index
    %c0_88 = arith.constant 0 : index
    %c0_89 = arith.constant 0 : index
    %155 = vector.load %arg15[%c0_87, %c0_88, %c0_89] : memref<2x32x64xbf16, #tpu.memory_space<vmem>>, vector<1x32x64xbf16>
    %156 = vector.shape_cast %155 : vector<1x32x64xbf16> to vector<32x64xbf16>
    %cst_90 = arith.constant dense<0.000000e+00> : vector<8x64xf32>
    %157 = tpu.matmul %154, %156, %cst_90 {dimension_numbers = #tpu.dot_dimension_numbers<[1], [0], [0], [1], [0, 0, 1, 1], [], []>} : vector<8x32xbf16>, vector<32x64xbf16>, vector<8x64xf32> -> vector<8x64xf32>
    %c0_91 = arith.constant 0 : index
    %c0_92 = arith.constant 0 : index
    %c0_93 = arith.constant 0 : index
    %158 = vector.load %arg16[%c0_91, %c0_92, %c0_93] : memref<2x1x64xf32, #tpu.memory_space<vmem>>, vector<1x1x64xf32>
    %159 = vector.shape_cast %158 : vector<1x1x64xf32> to vector<1x64xf32>
    %160 = vector.broadcast %159 : vector<1x64xf32> to vector<8x64xf32>
    %161 = arith.addf %157, %160 : vector<8x64xf32>
    %162 = arith.mulf %161, %161 : vector<8x64xf32>
    %163 = arith.mulf %161, %162 : vector<8x64xf32>
    %cst_94 = arith.constant 4.471500e-02 : f32
    %164 = vector.broadcast %cst_94 : f32 to vector<8x64xf32>
    %165 = arith.mulf %164, %163 : vector<8x64xf32>
    %166 = arith.addf %161, %165 : vector<8x64xf32>
    %cst_95 = arith.constant 0.797884583 : f32
    %167 = vector.broadcast %cst_95 : f32 to vector<8x64xf32>
    %168 = arith.mulf %167, %166 : vector<8x64xf32>
    %169 = math.tanh %168 : vector<8x64xf32>
    %cst_96 = arith.constant 1.000000e+00 : f32
    %170 = vector.broadcast %cst_96 : f32 to vector<8x64xf32>
    %171 = arith.addf %170, %169 : vector<8x64xf32>
    %cst_97 = arith.constant 5.000000e-01 : f32
    %172 = vector.broadcast %cst_97 : f32 to vector<8x64xf32>
    %173 = arith.mulf %172, %171 : vector<8x64xf32>
    %174 = arith.mulf %161, %173 : vector<8x64xf32>
    %175 = arith.truncf %174 : vector<8x64xf32> to vector<8x64xbf16>
    %c0_98 = arith.constant 0 : index
    %c0_99 = arith.constant 0 : index
    %c0_100 = arith.constant 0 : index
    %176 = vector.load %arg17[%c0_98, %c0_99, %c0_100] : memref<2x64x32xbf16, #tpu.memory_space<vmem>>, vector<1x64x32xbf16>
    %177 = vector.shape_cast %176 : vector<1x64x32xbf16> to vector<64x32xbf16>
    %cst_101 = arith.constant dense<0.000000e+00> : vector<8x32xf32>
    %178 = tpu.matmul %175, %177, %cst_101 {dimension_numbers = #tpu.dot_dimension_numbers<[1], [0], [0], [1], [0, 0, 1, 1], [], []>} : vector<8x64xbf16>, vector<64x32xbf16>, vector<8x32xf32> -> vector<8x32xf32>
    %c0_102 = arith.constant 0 : index
    %c0_103 = arith.constant 0 : index
    %c0_104 = arith.constant 0 : index
    %179 = vector.load %arg18[%c0_102, %c0_103, %c0_104] : memref<2x1x32xf32, #tpu.memory_space<vmem>>, vector<1x1x32xf32>
    %180 = vector.shape_cast %179 : vector<1x1x32xf32> to vector<1x32xf32>
    %181 = vector.broadcast %180 : vector<1x32xf32> to vector<8x32xf32>
    %182 = arith.addf %178, %181 : vector<8x32xf32>
    %183 = arith.addf %153, %182 : vector<8x32xf32>
    %c0_105 = arith.constant 0 : index
    %c0_106 = arith.constant 0 : index
    %c0_107 = arith.constant 0 : index
    %184 = vector.load %arg19[%c0_105, %c0_106, %c0_107] : memref<2x1x32xf32, #tpu.memory_space<vmem>>, vector<1x1x32xf32>
    %185 = vector.shape_cast %184 : vector<1x1x32xf32> to vector<1x32xf32>
    %c0_108 = arith.constant 0 : index
    %c0_109 = arith.constant 0 : index
    %c0_110 = arith.constant 0 : index
    %186 = vector.load %arg20[%c0_108, %c0_109, %c0_110] : memref<2x1x32xf32, #tpu.memory_space<vmem>>, vector<1x1x32xf32>
    %187 = vector.shape_cast %186 : vector<1x1x32xf32> to vector<1x32xf32>
    %cst_111 = arith.constant dense<0.000000e+00> : vector<8xf32>
    %188 = vector.multi_reduction <add>, %183, %cst_111 [1] : vector<8x32xf32> to vector<8xf32>
    %189 = vector.shape_cast %188 : vector<8xf32> to vector<8x1xf32>
    %cst_112 = arith.constant 3.200000e+01 : f32
    %190 = vector.broadcast %cst_112 : f32 to vector<8x1xf32>
    %191 = arith.divf %189, %190 : vector<8x1xf32>
    %192 = vector.broadcast %191 : vector<8x1xf32> to vector<8x32xf32>
    %193 = arith.subf %183, %192 : vector<8x32xf32>
    %194 = arith.mulf %193, %193 : vector<8x32xf32>
    %cst_113 = arith.constant dense<0.000000e+00> : vector<8xf32>
    %195 = vector.multi_reduction <add>, %194, %cst_113 [1] : vector<8x32xf32> to vector<8xf32>
    %196 = vector.shape_cast %195 : vector<8xf32> to vector<8x1xf32>
    %cst_114 = arith.constant 3.200000e+01 : f32
    %197 = vector.broadcast %cst_114 : f32 to vector<8x1xf32>
    %198 = arith.divf %196, %197 : vector<8x1xf32>
    %cst_115 = arith.constant 9.99999996E-13 : f32
    %199 = vector.broadcast %cst_115 : f32 to vector<8x1xf32>
    %200 = arith.addf %198, %199 : vector<8x1xf32>
    %201 = math.rsqrt %200 : vector<8x1xf32>
    %202 = vector.broadcast %191 : vector<8x1xf32> to vector<8x32xf32>
    %203 = arith.subf %183, %202 : vector<8x32xf32>
    %204 = vector.broadcast %201 : vector<8x1xf32> to vector<8x32xf32>
    %205 = arith.mulf %203, %204 : vector<8x32xf32>
    %206 = vector.broadcast %185 : vector<1x32xf32> to vector<8x32xf32>
    %207 = arith.mulf %205, %206 : vector<8x32xf32>
    %208 = vector.broadcast %187 : vector<1x32xf32> to vector<8x32xf32>
    %209 = arith.addf %207, %208 : vector<8x32xf32>
    %210 = arith.truncf %209 : vector<8x32xf32> to vector<8x32xbf16>
    %cst_116 = arith.constant 0.000000e+00 : f32
    %211 = vector.broadcast %cst_116 : f32 to vector<8x32xf32>
    %c2 = arith.constant 2 : index
    %c0_117 = arith.constant 0 : index
    %c0_118 = arith.constant 0 : index
    %212 = vector.load %arg5[%c2, %c0_117, %c0_118] : memref<4x32x16xbf16, #tpu.memory_space<vmem>>, vector<1x32x16xbf16>
    %213 = vector.shape_cast %212 : vector<1x32x16xbf16> to vector<32x16xbf16>
    %cst_119 = arith.constant dense<0.000000e+00> : vector<8x16xf32>
    %214 = tpu.matmul %210, %213, %cst_119 {dimension_numbers = #tpu.dot_dimension_numbers<[1], [0], [0], [1], [0, 0, 1, 1], [], []>} : vector<8x32xbf16>, vector<32x16xbf16>, vector<8x16xf32> -> vector<8x16xf32>
    %c2_120 = arith.constant 2 : index
    %c0_121 = arith.constant 0 : index
    %c0_122 = arith.constant 0 : index
    %215 = vector.load %arg6[%c2_120, %c0_121, %c0_122] : memref<4x1x16xf32, #tpu.memory_space<vmem>>, vector<1x1x16xf32>
    %216 = vector.shape_cast %215 : vector<1x1x16xf32> to vector<1x16xf32>
    %217 = vector.broadcast %216 : vector<1x16xf32> to vector<8x16xf32>
    %218 = arith.addf %214, %217 : vector<8x16xf32>
    %c2_123 = arith.constant 2 : index
    %c0_124 = arith.constant 0 : index
    %c0_125 = arith.constant 0 : index
    %219 = vector.load %arg7[%c2_123, %c0_124, %c0_125] : memref<4x32x16xbf16, #tpu.memory_space<vmem>>, vector<1x32x16xbf16>
    %220 = vector.shape_cast %219 : vector<1x32x16xbf16> to vector<32x16xbf16>
    %cst_126 = arith.constant dense<0.000000e+00> : vector<8x16xf32>
    %221 = tpu.matmul %210, %220, %cst_126 {dimension_numbers = #tpu.dot_dimension_numbers<[1], [0], [0], [1], [0, 0, 1, 1], [], []>} : vector<8x32xbf16>, vector<32x16xbf16>, vector<8x16xf32> -> vector<8x16xf32>
    %c2_127 = arith.constant 2 : index
    %c0_128 = arith.constant 0 : index
    %c0_129 = arith.constant 0 : index
    %222 = vector.load %arg8[%c2_127, %c0_128, %c0_129] : memref<4x1x16xf32, #tpu.memory_space<vmem>>, vector<1x1x16xf32>
    %223 = vector.shape_cast %222 : vector<1x1x16xf32> to vector<1x16xf32>
    %224 = vector.broadcast %223 : vector<1x16xf32> to vector<8x16xf32>
    %225 = arith.addf %221, %224 : vector<8x16xf32>
    %c2_130 = arith.constant 2 : index
    %c0_131 = arith.constant 0 : index
    %c0_132 = arith.constant 0 : index
    %226 = vector.load %arg9[%c2_130, %c0_131, %c0_132] : memref<4x32x16xbf16, #tpu.memory_space<vmem>>, vector<1x32x16xbf16>
    %227 = vector.shape_cast %226 : vector<1x32x16xbf16> to vector<32x16xbf16>
    %cst_133 = arith.constant dense<0.000000e+00> : vector<8x16xf32>
    %228 = tpu.matmul %210, %227, %cst_133 {dimension_numbers = #tpu.dot_dimension_numbers<[1], [0], [0], [1], [0, 0, 1, 1], [], []>} : vector<8x32xbf16>, vector<32x16xbf16>, vector<8x16xf32> -> vector<8x16xf32>
    %c2_134 = arith.constant 2 : index
    %c0_135 = arith.constant 0 : index
    %c0_136 = arith.constant 0 : index
    %229 = vector.load %arg10[%c2_134, %c0_135, %c0_136] : memref<4x1x16xf32, #tpu.memory_space<vmem>>, vector<1x1x16xf32>
    %230 = vector.shape_cast %229 : vector<1x1x16xf32> to vector<1x16xf32>
    %231 = vector.broadcast %230 : vector<1x16xf32> to vector<8x16xf32>
    %232 = arith.addf %228, %231 : vector<8x16xf32>
    %233 = arith.truncf %218 : vector<8x16xf32> to vector<8x16xbf16>
    %234 = arith.truncf %225 : vector<8x16xf32> to vector<8x16xbf16>
    %cst_137 = arith.constant dense<0.000000e+00> : vector<8x8xf32>
    %235 = tpu.matmul %233, %234, %cst_137 {dimension_numbers = #tpu.dot_dimension_numbers<[1], [1], [0], [0], [0, 0, 1, 0], [], []>} : vector<8x16xbf16>, vector<8x16xbf16>, vector<8x8xf32> -> vector<8x8xf32>
    %236 = vector.broadcast %6 : vector<1x8xf32> to vector<8x8xf32>
    %237 = arith.addf %235, %236 : vector<8x8xf32>
    %cst_138 = arith.constant dense<0xFF800000> : vector<8xf32>
    %238 = vector.multi_reduction <maximumf>, %237, %cst_138 [1] : vector<8x8xf32> to vector<8xf32>
    %239 = vector.shape_cast %238 : vector<8xf32> to vector<8x1xf32>
    %240 = vector.broadcast %239 : vector<8x1xf32> to vector<8x8xf32>
    %241 = arith.subf %237, %240 : vector<8x8xf32>
    %242 = math.exp %241 : vector<8x8xf32>
    %cst_139 = arith.constant dense<0.000000e+00> : vector<8xf32>
    %243 = vector.multi_reduction <add>, %242, %cst_139 [1] : vector<8x8xf32> to vector<8xf32>
    %244 = vector.shape_cast %243 : vector<8xf32> to vector<8x1xf32>
    %245 = tpu.reciprocal %244 {approx = true} : vector<8x1xf32> -> vector<8x1xf32>
    %246 = vector.broadcast %245 : vector<8x1xf32> to vector<8x8xf32>
    %247 = arith.mulf %242, %246 : vector<8x8xf32>
    %248 = arith.truncf %247 : vector<8x8xf32> to vector<8x8xbf16>
    %249 = arith.truncf %232 : vector<8x16xf32> to vector<8x16xbf16>
    %cst_140 = arith.constant dense<0.000000e+00> : vector<8x16xf32>
    %250 = tpu.matmul %248, %249, %cst_140 {dimension_numbers = #tpu.dot_dimension_numbers<[1], [0], [0], [1], [0, 0, 1, 1], [], []>} : vector<8x8xbf16>, vector<8x16xbf16>, vector<8x16xf32> -> vector<8x16xf32>
    %251 = arith.truncf %250 : vector<8x16xf32> to vector<8x16xbf16>
    %c2_141 = arith.constant 2 : index
    %c0_142 = arith.constant 0 : index
    %c0_143 = arith.constant 0 : index
    %252 = vector.load %arg11[%c2_141, %c0_142, %c0_143] : memref<4x16x32xbf16, #tpu.memory_space<vmem>>, vector<1x16x32xbf16>
    %253 = vector.shape_cast %252 : vector<1x16x32xbf16> to vector<16x32xbf16>
    %cst_144 = arith.constant dense<0.000000e+00> : vector<8x32xf32>
    %254 = tpu.matmul %251, %253, %cst_144 {dimension_numbers = #tpu.dot_dimension_numbers<[1], [0], [0], [1], [0, 0, 1, 1], [], []>} : vector<8x16xbf16>, vector<16x32xbf16>, vector<8x32xf32> -> vector<8x32xf32>
    %255 = arith.addf %211, %254 : vector<8x32xf32>
    %c3 = arith.constant 3 : index
    %c0_145 = arith.constant 0 : index
    %c0_146 = arith.constant 0 : index
    %256 = vector.load %arg5[%c3, %c0_145, %c0_146] : memref<4x32x16xbf16, #tpu.memory_space<vmem>>, vector<1x32x16xbf16>
    %257 = vector.shape_cast %256 : vector<1x32x16xbf16> to vector<32x16xbf16>
    %cst_147 = arith.constant dense<0.000000e+00> : vector<8x16xf32>
    %258 = tpu.matmul %210, %257, %cst_147 {dimension_numbers = #tpu.dot_dimension_numbers<[1], [0], [0], [1], [0, 0, 1, 1], [], []>} : vector<8x32xbf16>, vector<32x16xbf16>, vector<8x16xf32> -> vector<8x16xf32>
    %c3_148 = arith.constant 3 : index
    %c0_149 = arith.constant 0 : index
    %c0_150 = arith.constant 0 : index
    %259 = vector.load %arg6[%c3_148, %c0_149, %c0_150] : memref<4x1x16xf32, #tpu.memory_space<vmem>>, vector<1x1x16xf32>
    %260 = vector.shape_cast %259 : vector<1x1x16xf32> to vector<1x16xf32>
    %261 = vector.broadcast %260 : vector<1x16xf32> to vector<8x16xf32>
    %262 = arith.addf %258, %261 : vector<8x16xf32>
    %c3_151 = arith.constant 3 : index
    %c0_152 = arith.constant 0 : index
    %c0_153 = arith.constant 0 : index
    %263 = vector.load %arg7[%c3_151, %c0_152, %c0_153] : memref<4x32x16xbf16, #tpu.memory_space<vmem>>, vector<1x32x16xbf16>
    %264 = vector.shape_cast %263 : vector<1x32x16xbf16> to vector<32x16xbf16>
    %cst_154 = arith.constant dense<0.000000e+00> : vector<8x16xf32>
    %265 = tpu.matmul %210, %264, %cst_154 {dimension_numbers = #tpu.dot_dimension_numbers<[1], [0], [0], [1], [0, 0, 1, 1], [], []>} : vector<8x32xbf16>, vector<32x16xbf16>, vector<8x16xf32> -> vector<8x16xf32>
    %c3_155 = arith.constant 3 : index
    %c0_156 = arith.constant 0 : index
    %c0_157 = arith.constant 0 : index
    %266 = vector.load %arg8[%c3_155, %c0_156, %c0_157] : memref<4x1x16xf32, #tpu.memory_space<vmem>>, vector<1x1x16xf32>
    %267 = vector.shape_cast %266 : vector<1x1x16xf32> to vector<1x16xf32>
    %268 = vector.broadcast %267 : vector<1x16xf32> to vector<8x16xf32>
    %269 = arith.addf %265, %268 : vector<8x16xf32>
    %c3_158 = arith.constant 3 : index
    %c0_159 = arith.constant 0 : index
    %c0_160 = arith.constant 0 : index
    %270 = vector.load %arg9[%c3_158, %c0_159, %c0_160] : memref<4x32x16xbf16, #tpu.memory_space<vmem>>, vector<1x32x16xbf16>
    %271 = vector.shape_cast %270 : vector<1x32x16xbf16> to vector<32x16xbf16>
    %cst_161 = arith.constant dense<0.000000e+00> : vector<8x16xf32>
    %272 = tpu.matmul %210, %271, %cst_161 {dimension_numbers = #tpu.dot_dimension_numbers<[1], [0], [0], [1], [0, 0, 1, 1], [], []>} : vector<8x32xbf16>, vector<32x16xbf16>, vector<8x16xf32> -> vector<8x16xf32>
    %c3_162 = arith.constant 3 : index
    %c0_163 = arith.constant 0 : index
    %c0_164 = arith.constant 0 : index
    %273 = vector.load %arg10[%c3_162, %c0_163, %c0_164] : memref<4x1x16xf32, #tpu.memory_space<vmem>>, vector<1x1x16xf32>
    %274 = vector.shape_cast %273 : vector<1x1x16xf32> to vector<1x16xf32>
    %275 = vector.broadcast %274 : vector<1x16xf32> to vector<8x16xf32>
    %276 = arith.addf %272, %275 : vector<8x16xf32>
    %277 = arith.truncf %262 : vector<8x16xf32> to vector<8x16xbf16>
    %278 = arith.truncf %269 : vector<8x16xf32> to vector<8x16xbf16>
    %cst_165 = arith.constant dense<0.000000e+00> : vector<8x8xf32>
    %279 = tpu.matmul %277, %278, %cst_165 {dimension_numbers = #tpu.dot_dimension_numbers<[1], [1], [0], [0], [0, 0, 1, 0], [], []>} : vector<8x16xbf16>, vector<8x16xbf16>, vector<8x8xf32> -> vector<8x8xf32>
    %280 = vector.broadcast %6 : vector<1x8xf32> to vector<8x8xf32>
    %281 = arith.addf %279, %280 : vector<8x8xf32>
    %cst_166 = arith.constant dense<0xFF800000> : vector<8xf32>
    %282 = vector.multi_reduction <maximumf>, %281, %cst_166 [1] : vector<8x8xf32> to vector<8xf32>
    %283 = vector.shape_cast %282 : vector<8xf32> to vector<8x1xf32>
    %284 = vector.broadcast %283 : vector<8x1xf32> to vector<8x8xf32>
    %285 = arith.subf %281, %284 : vector<8x8xf32>
    %286 = math.exp %285 : vector<8x8xf32>
    %cst_167 = arith.constant dense<0.000000e+00> : vector<8xf32>
    %287 = vector.multi_reduction <add>, %286, %cst_167 [1] : vector<8x8xf32> to vector<8xf32>
    %288 = vector.shape_cast %287 : vector<8xf32> to vector<8x1xf32>
    %289 = tpu.reciprocal %288 {approx = true} : vector<8x1xf32> -> vector<8x1xf32>
    %290 = vector.broadcast %289 : vector<8x1xf32> to vector<8x8xf32>
    %291 = arith.mulf %286, %290 : vector<8x8xf32>
    %292 = arith.truncf %291 : vector<8x8xf32> to vector<8x8xbf16>
    %293 = arith.truncf %276 : vector<8x16xf32> to vector<8x16xbf16>
    %cst_168 = arith.constant dense<0.000000e+00> : vector<8x16xf32>
    %294 = tpu.matmul %292, %293, %cst_168 {dimension_numbers = #tpu.dot_dimension_numbers<[1], [0], [0], [1], [0, 0, 1, 1], [], []>} : vector<8x8xbf16>, vector<8x16xbf16>, vector<8x16xf32> -> vector<8x16xf32>
    %295 = arith.truncf %294 : vector<8x16xf32> to vector<8x16xbf16>
    %c3_169 = arith.constant 3 : index
    %c0_170 = arith.constant 0 : index
    %c0_171 = arith.constant 0 : index
    %296 = vector.load %arg11[%c3_169, %c0_170, %c0_171] : memref<4x16x32xbf16, #tpu.memory_space<vmem>>, vector<1x16x32xbf16>
    %297 = vector.shape_cast %296 : vector<1x16x32xbf16> to vector<16x32xbf16>
    %cst_172 = arith.constant dense<0.000000e+00> : vector<8x32xf32>
    %298 = tpu.matmul %295, %297, %cst_172 {dimension_numbers = #tpu.dot_dimension_numbers<[1], [0], [0], [1], [0, 0, 1, 1], [], []>} : vector<8x16xbf16>, vector<16x32xbf16>, vector<8x32xf32> -> vector<8x32xf32>
    %299 = arith.addf %255, %298 : vector<8x32xf32>
    %c1_173 = arith.constant 1 : index
    %c0_174 = arith.constant 0 : index
    %c0_175 = arith.constant 0 : index
    %300 = vector.load %arg12[%c1_173, %c0_174, %c0_175] : memref<2x1x32xf32, #tpu.memory_space<vmem>>, vector<1x1x32xf32>
    %301 = vector.shape_cast %300 : vector<1x1x32xf32> to vector<1x32xf32>
    %302 = vector.broadcast %301 : vector<1x32xf32> to vector<8x32xf32>
    %303 = arith.addf %299, %302 : vector<8x32xf32>
    %304 = arith.addf %209, %303 : vector<8x32xf32>
    %c1_176 = arith.constant 1 : index
    %c0_177 = arith.constant 0 : index
    %c0_178 = arith.constant 0 : index
    %305 = vector.load %arg13[%c1_176, %c0_177, %c0_178] : memref<2x1x32xf32, #tpu.memory_space<vmem>>, vector<1x1x32xf32>
    %306 = vector.shape_cast %305 : vector<1x1x32xf32> to vector<1x32xf32>
    %c1_179 = arith.constant 1 : index
    %c0_180 = arith.constant 0 : index
    %c0_181 = arith.constant 0 : index
    %307 = vector.load %arg14[%c1_179, %c0_180, %c0_181] : memref<2x1x32xf32, #tpu.memory_space<vmem>>, vector<1x1x32xf32>
    %308 = vector.shape_cast %307 : vector<1x1x32xf32> to vector<1x32xf32>
    %cst_182 = arith.constant dense<0.000000e+00> : vector<8xf32>
    %309 = vector.multi_reduction <add>, %304, %cst_182 [1] : vector<8x32xf32> to vector<8xf32>
    %310 = vector.shape_cast %309 : vector<8xf32> to vector<8x1xf32>
    %cst_183 = arith.constant 3.200000e+01 : f32
    %311 = vector.broadcast %cst_183 : f32 to vector<8x1xf32>
    %312 = arith.divf %310, %311 : vector<8x1xf32>
    %313 = vector.broadcast %312 : vector<8x1xf32> to vector<8x32xf32>
    %314 = arith.subf %304, %313 : vector<8x32xf32>
    %315 = arith.mulf %314, %314 : vector<8x32xf32>
    %cst_184 = arith.constant dense<0.000000e+00> : vector<8xf32>
    %316 = vector.multi_reduction <add>, %315, %cst_184 [1] : vector<8x32xf32> to vector<8xf32>
    %317 = vector.shape_cast %316 : vector<8xf32> to vector<8x1xf32>
    %cst_185 = arith.constant 3.200000e+01 : f32
    %318 = vector.broadcast %cst_185 : f32 to vector<8x1xf32>
    %319 = arith.divf %317, %318 : vector<8x1xf32>
    %cst_186 = arith.constant 9.99999996E-13 : f32
    %320 = vector.broadcast %cst_186 : f32 to vector<8x1xf32>
    %321 = arith.addf %319, %320 : vector<8x1xf32>
    %322 = math.rsqrt %321 : vector<8x1xf32>
    %323 = vector.broadcast %312 : vector<8x1xf32> to vector<8x32xf32>
    %324 = arith.subf %304, %323 : vector<8x32xf32>
    %325 = vector.broadcast %322 : vector<8x1xf32> to vector<8x32xf32>
    %326 = arith.mulf %324, %325 : vector<8x32xf32>
    %327 = vector.broadcast %306 : vector<1x32xf32> to vector<8x32xf32>
    %328 = arith.mulf %326, %327 : vector<8x32xf32>
    %329 = vector.broadcast %308 : vector<1x32xf32> to vector<8x32xf32>
    %330 = arith.addf %328, %329 : vector<8x32xf32>
    %331 = arith.truncf %330 : vector<8x32xf32> to vector<8x32xbf16>
    %c1_187 = arith.constant 1 : index
    %c0_188 = arith.constant 0 : index
    %c0_189 = arith.constant 0 : index
    %332 = vector.load %arg15[%c1_187, %c0_188, %c0_189] : memref<2x32x64xbf16, #tpu.memory_space<vmem>>, vector<1x32x64xbf16>
    %333 = vector.shape_cast %332 : vector<1x32x64xbf16> to vector<32x64xbf16>
    %cst_190 = arith.constant dense<0.000000e+00> : vector<8x64xf32>
    %334 = tpu.matmul %331, %333, %cst_190 {dimension_numbers = #tpu.dot_dimension_numbers<[1], [0], [0], [1], [0, 0, 1, 1], [], []>} : vector<8x32xbf16>, vector<32x64xbf16>, vector<8x64xf32> -> vector<8x64xf32>
    %c1_191 = arith.constant 1 : index
    %c0_192 = arith.constant 0 : index
    %c0_193 = arith.constant 0 : index
    %335 = vector.load %arg16[%c1_191, %c0_192, %c0_193] : memref<2x1x64xf32, #tpu.memory_space<vmem>>, vector<1x1x64xf32>
    %336 = vector.shape_cast %335 : vector<1x1x64xf32> to vector<1x64xf32>
    %337 = vector.broadcast %336 : vector<1x64xf32> to vector<8x64xf32>
    %338 = arith.addf %334, %337 : vector<8x64xf32>
    %339 = arith.mulf %338, %338 : vector<8x64xf32>
    %340 = arith.mulf %338, %339 : vector<8x64xf32>
    %cst_194 = arith.constant 4.471500e-02 : f32
    %341 = vector.broadcast %cst_194 : f32 to vector<8x64xf32>
    %342 = arith.mulf %341, %340 : vector<8x64xf32>
    %343 = arith.addf %338, %342 : vector<8x64xf32>
    %cst_195 = arith.constant 0.797884583 : f32
    %344 = vector.broadcast %cst_195 : f32 to vector<8x64xf32>
    %345 = arith.mulf %344, %343 : vector<8x64xf32>
    %346 = math.tanh %345 : vector<8x64xf32>
    %cst_196 = arith.constant 1.000000e+00 : f32
    %347 = vector.broadcast %cst_196 : f32 to vector<8x64xf32>
    %348 = arith.addf %347, %346 : vector<8x64xf32>
    %cst_197 = arith.constant 5.000000e-01 : f32
    %349 = vector.broadcast %cst_197 : f32 to vector<8x64xf32>
    %350 = arith.mulf %349, %348 : vector<8x64xf32>
    %351 = arith.mulf %338, %350 : vector<8x64xf32>
    %352 = arith.truncf %351 : vector<8x64xf32> to vector<8x64xbf16>
    %c1_198 = arith.constant 1 : index
    %c0_199 = arith.constant 0 : index
    %c0_200 = arith.constant 0 : index
    %353 = vector.load %arg17[%c1_198, %c0_199, %c0_200] : memref<2x64x32xbf16, #tpu.memory_space<vmem>>, vector<1x64x32xbf16>
    %354 = vector.shape_cast %353 : vector<1x64x32xbf16> to vector<64x32xbf16>
    %cst_201 = arith.constant dense<0.000000e+00> : vector<8x32xf32>
    %355 = tpu.matmul %352, %354, %cst_201 {dimension_numbers = #tpu.dot_dimension_numbers<[1], [0], [0], [1], [0, 0, 1, 1], [], []>} : vector<8x64xbf16>, vector<64x32xbf16>, vector<8x32xf32> -> vector<8x32xf32>
    %c1_202 = arith.constant 1 : index
    %c0_203 = arith.constant 0 : index
    %c0_204 = arith.constant 0 : index
    %356 = vector.load %arg18[%c1_202, %c0_203, %c0_204] : memref<2x1x32xf32, #tpu.memory_space<vmem>>, vector<1x1x32xf32>
    %357 = vector.shape_cast %356 : vector<1x1x32xf32> to vector<1x32xf32>
    %358 = vector.broadcast %357 : vector<1x32xf32> to vector<8x32xf32>
    %359 = arith.addf %355, %358 : vector<8x32xf32>
    %360 = arith.addf %330, %359 : vector<8x32xf32>
    %c1_205 = arith.constant 1 : index
    %c0_206 = arith.constant 0 : index
    %c0_207 = arith.constant 0 : index
    %361 = vector.load %arg19[%c1_205, %c0_206, %c0_207] : memref<2x1x32xf32, #tpu.memory_space<vmem>>, vector<1x1x32xf32>
    %362 = vector.shape_cast %361 : vector<1x1x32xf32> to vector<1x32xf32>
    %c1_208 = arith.constant 1 : index
    %c0_209 = arith.constant 0 : index
    %c0_210 = arith.constant 0 : index
    %363 = vector.load %arg20[%c1_208, %c0_209, %c0_210] : memref<2x1x32xf32, #tpu.memory_space<vmem>>, vector<1x1x32xf32>
    %364 = vector.shape_cast %363 : vector<1x1x32xf32> to vector<1x32xf32>
    %cst_211 = arith.constant dense<0.000000e+00> : vector<8xf32>
    %365 = vector.multi_reduction <add>, %360, %cst_211 [1] : vector<8x32xf32> to vector<8xf32>
    %366 = vector.shape_cast %365 : vector<8xf32> to vector<8x1xf32>
    %cst_212 = arith.constant 3.200000e+01 : f32
    %367 = vector.broadcast %cst_212 : f32 to vector<8x1xf32>
    %368 = arith.divf %366, %367 : vector<8x1xf32>
    %369 = vector.broadcast %368 : vector<8x1xf32> to vector<8x32xf32>
    %370 = arith.subf %360, %369 : vector<8x32xf32>
    %371 = arith.mulf %370, %370 : vector<8x32xf32>
    %cst_213 = arith.constant dense<0.000000e+00> : vector<8xf32>
    %372 = vector.multi_reduction <add>, %371, %cst_213 [1] : vector<8x32xf32> to vector<8xf32>
    %373 = vector.shape_cast %372 : vector<8xf32> to vector<8x1xf32>
    %cst_214 = arith.constant 3.200000e+01 : f32
    %374 = vector.broadcast %cst_214 : f32 to vector<8x1xf32>
    %375 = arith.divf %373, %374 : vector<8x1xf32>
    %cst_215 = arith.constant 9.99999996E-13 : f32
    %376 = vector.broadcast %cst_215 : f32 to vector<8x1xf32>
    %377 = arith.addf %375, %376 : vector<8x1xf32>
    %378 = math.rsqrt %377 : vector<8x1xf32>
    %379 = vector.broadcast %368 : vector<8x1xf32> to vector<8x32xf32>
    %380 = arith.subf %360, %379 : vector<8x32xf32>
    %381 = vector.broadcast %378 : vector<8x1xf32> to vector<8x32xf32>
    %382 = arith.mulf %380, %381 : vector<8x32xf32>
    %383 = vector.broadcast %362 : vector<1x32xf32> to vector<8x32xf32>
    %384 = arith.mulf %382, %383 : vector<8x32xf32>
    %385 = vector.broadcast %364 : vector<1x32xf32> to vector<8x32xf32>
    %386 = arith.addf %384, %385 : vector<8x32xf32>
    %c0_216 = arith.constant 0 : index
    %c0_217 = arith.constant 0 : index
    %c0_218 = arith.constant 0 : index
    %387 = vector.load %arg21[%c0_216, %c0_217, %c0_218] : memref<1x8x32xf32, #tpu.memory_space<vmem>>, vector<1x8x32xf32>
    %388 = vector.shape_cast %387 : vector<1x8x32xf32> to vector<8x32xf32>
    %389 = vector.shape_cast %386 : vector<8x32xf32> to vector<1x8x32xf32>
    tpu.vector_store %arg21[%c0_216, %c0_217, %c0_218], %389 {strides = array<i32>} : memref<1x8x32xf32, #tpu.memory_space<vmem>>, vector<1x8x32xf32>,
    return
  }
  func.func @transform_0(%arg0: i32) -> (i32, i32, i32) {
    %c0_i32 = arith.constant 0 : i32
    %c0_i32_0 = arith.constant 0 : i32
    %c0_i32_1 = arith.constant 0 : i32
    return %arg0, %c0_i32, %c0_i32_0 : i32, i32, i32
  }
  func.func @transform_1(%arg0: i32) -> (i32, i32, i32) {
    %c0_i32 = arith.constant 0 : i32
    %c0_i32_0 = arith.constant 0 : i32
    %c0_i32_1 = arith.constant 0 : i32
    return %arg0, %c0_i32, %c0_i32_0 : i32, i32, i32
  }
  func.func @transform_2(%arg0: i32) -> (i32, i32) {
    %c0_i32 = arith.constant 0 : i32
    %c0_i32_0 = arith.constant 0 : i32
    %c0_i32_1 = arith.constant 0 : i32
    return %c0_i32, %c0_i32_0 : i32, i32
  }
  func.func @transform_3(%arg0: i32) -> (i32, i32) {
    %c0_i32 = arith.constant 0 : i32
    %c0_i32_0 = arith.constant 0 : i32
    %c0_i32_1 = arith.constant 0 : i32
    return %c0_i32, %c0_i32_0 : i32, i32
  }
  func.func @transform_4(%arg0: i32) -> (i32, i32, i32) {
    %c0_i32 = arith.constant 0 : i32
    %c0_i32_0 = arith.constant 0 : i32
    %c0_i32_1 = arith.constant 0 : i32
    %c0_i32_2 = arith.constant 0 : i32
    return %c0_i32, %c0_i32_0, %c0_i32_1 : i32, i32, i32
  }
  func.func @transform_5(%arg0: i32) -> (i32, i32, i32) {
    %c0_i32 = arith.constant 0 : i32
    %c0_i32_0 = arith.constant 0 : i32
    %c0_i32_1 = arith.constant 0 : i32
    %c0_i32_2 = arith.constant 0 : i32
    return %c0_i32, %c0_i32_0, %c0_i32_1 : i32, i32, i32
  }
  func.func @transform_6(%arg0: i32) -> (i32, i32, i32) {
    %c0_i32 = arith.constant 0 : i32
    %c0_i32_0 = arith.constant 0 : i32
    %c0_i32_1 = arith.constant 0 : i32
    %c0_i32_2 = arith.constant 0 : i32
    return %c0_i32, %c0_i32_0, %c0_i32_1 : i32, i32, i32
  }
  func.func @transform_7(%arg0: i32) -> (i32, i32, i32) {
    %c0_i32 = arith.constant 0 : i32
    %c0_i32_0 = arith.constant 0 : i32
    %c0_i32_1 = arith.constant 0 : i32
    %c0_i32_2 = arith.constant 0 : i32
    return %c0_i32, %c0_i32_0, %c0_i32_1 : i32, i32, i32
  }
  func.func @transform_8(%arg0: i32) -> (i32, i32, i32) {
    %c0_i32 = arith.constant 0 : i32
    %c0_i32_0 = arith.constant 0 : i32
    %c0_i32_1 = arith.constant 0 : i32
    %c0_i32_2 = arith.constant 0 : i32
    return %c0_i32, %c0_i32_0, %c0_i32_1 : i32, i32, i32
  }
  func.func @transform_9(%arg0: i32) -> (i32, i32, i32) {
    %c0_i32 = arith.constant 0 : i32
    %c0_i32_0 = arith.constant 0 : i32
    %c0_i32_1 = arith.constant 0 : i32
    %c0_i32_2 = arith.constant 0 : i32
    return %c0_i32, %c0_i32_0, %c0_i32_1 : i32, i32, i32
  }
  func.func @transform_10(%arg0: i32) -> (i32, i32, i32) {
    %c0_i32 = arith.constant 0 : i32
    %c0_i32_0 = arith.constant 0 : i32
    %c0_i32_1 = arith.constant 0 : i32
    %c0_i32_2 = arith.constant 0 : i32
    return %c0_i32, %c0_i32_0, %c0_i32_1 : i32, i32, i32
  }
  func.func @transform_11(%arg0: i32) -> (i32, i32, i32) {
    %c0_i32 = arith.constant 0 : i32
    %c0_i32_0 = arith.constant 0 : i32
    %c0_i32_1 = arith.constant 0 : i32
    %c0_i32_2 = arith.constant 0 : i32
    return %c0_i32, %c0_i32_0, %c0_i32_1 : i32, i32, i32
  }
  func.func @transform_12(%arg0: i32) -> (i32, i32, i32) {
    %c0_i32 = arith.constant 0 : i32
    %c0_i32_0 = arith.constant 0 : i32
    %c0_i32_1 = arith.constant 0 : i32
    %c0_i32_2 = arith.constant 0 : i32
    return %c0_i32, %c0_i32_0, %c0_i32_1 : i32, i32, i32
  }
  func.func @transform_13(%arg0: i32) -> (i32, i32, i32) {
    %c0_i32 = arith.constant 0 : i32
    %c0_i32_0 = arith.constant 0 : i32
    %c0_i32_1 = arith.constant 0 : i32
    %c0_i32_2 = arith.constant 0 : i32
    return %c0_i32, %c0_i32_0, %c0_i32_1 : i32, i32, i32
  }
  func.func @transform_14(%arg0: i32) -> (i32, i32, i32) {
    %c0_i32 = arith.constant 0 : i32
    %c0_i32_0 = arith.constant 0 : i32
    %c0_i32_1 = arith.constant 0 : i32
    %c0_i32_2 = arith.constant 0 : i32
    return %c0_i32, %c0_i32_0, %c0_i32_1 : i32, i32, i32
  }
  func.func @transform_15(%arg0: i32) -> (i32, i32, i32) {
    %c0_i32 = arith.constant 0 : i32
    %c0_i32_0 = arith.constant 0 : i32
    %c0_i32_1 = arith.constant 0 : i32
    %c0_i32_2 = arith.constant 0 : i32
    return %c0_i32, %c0_i32_0, %c0_i32_1 : i32, i32, i32
  }
  func.func @transform_16(%arg0: i32) -> (i32, i32, i32) {
    %c0_i32 = arith.constant 0 : i32
    %c0_i32_0 = arith.constant 0 : i32
    %c0_i32_1 = arith.constant 0 : i32
    %c0_i32_2 = arith.constant 0 : i32
    return %c0_i32, %c0_i32_0, %c0_i32_1 : i32, i32, i32
  }
  func.func @transform_17(%arg0: i32) -> (i32, i32, i32) {
    %c0_i32 = arith.constant 0 : i32
    %c0_i32_0 = arith.constant 0 : i32
    %c0_i32_1 = arith.constant 0 : i32
    %c0_i32_2 = arith.constant 0 : i32
    return %c0_i32, %c0_i32_0, %c0_i32_1 : i32, i32, i32
  }
  func.func @transform_18(%arg0: i32) -> (i32, i32, i32) {
    %c0_i32 = arith.constant 0 : i32
    %c0_i32_0 = arith.constant 0 : i32
    %c0_i32_1 = arith.constant 0 : i32
    %c0_i32_2 = arith.constant 0 : i32
    return %c0_i32, %c0_i32_0, %c0_i32_1 : i32, i32, i32
  }
  func.func @transform_19(%arg0: i32) -> (i32, i32, i32) {
    %c0_i32 = arith.constant 0 : i32
    %c0_i32_0 = arith.constant 0 : i32
    %c0_i32_1 = arith.constant 0 : i32
    %c0_i32_2 = arith.constant 0 : i32
    return %c0_i32, %c0_i32_0, %c0_i32_1 : i32, i32, i32
  }
  func.func @transform_20(%arg0: i32) -> (i32, i32, i32) {
    %c0_i32 = arith.constant 0 : i32
    %c0_i32_0 = arith.constant 0 : i32
    %c0_i32_1 = arith.constant 0 : i32
    return %arg0, %c0_i32, %c0_i32_0 : i32, i32, i32
  }
}

</mosaic_0001>

<bundles_post_ra>
// kernel: tpu_custom_call.1
= control target key start
LH: loop header
LB: loop body
LE: loop exit
PB: predicated region body
PF: predicated region fallthrough
CT: control target
= control target key end

     0   :  { %s3883_s0 = inlined_call_operand.vmem [shape: s32[2,1,8], index: 0, kind: input, shape index: {}]   ;;  %s3884_s1 = inlined_call_operand.vmem [shape: f32[2,8,32], index: 1, kind: input, shape index: {}]   ;;  %s3885_s2 = inlined_call_operand.vmem [shape: f32[1,32], index: 2, kind: input, shape index: {}]   ;;  %s3886_s3 = inlined_call_operand.vmem [shape: f32[1,32], index: 3, kind: input, shape index: {}]   ;;  %s3887_s4 = inlined_call_operand.vmem [shape: bf16[4,32,16], index: 4, kind: input, shape index: {}]   ;;  %s3888_s5 = inlined_call_operand.vmem [shape: f32[4,1,16], index: 5, kind: input, shape index: {}]   ;;  %s3889_s6 = inlined_call_operand.vmem [shape: bf16[4,32,16], index: 6, kind: input, shape index: {}]   ;;  %s3890_s7 = inlined_call_operand.vmem [shape: f32[4,1,16], index: 7, kind: input, shape index: {}]   ;;  %s3891_s8 = inlined_call_operand.vmem [shape: bf16[4,32,16], index: 8, kind: input, shape index: {}]   ;;  %s3892_s9 = inlined_call_operand.vmem [shape: f32[4,1,16], index: 9, kind: input, shape index: {}]   ;;  %s3893_s10 = inlined_call_operand.vmem [shape: bf16[4,16,32], index: 10, kind: input, shape index: {}]   ;;  %s3894_s11 = inlined_call_operand.vmem [shape: f32[2,1,32], index: 11, kind: input, shape index: {}]   ;;  %s3895_s12 = inlined_call_operand.vmem [shape: f32[2,1,32], index: 12, kind: input, shape index: {}]   ;;  %s3896_s13 = inlined_call_operand.vmem [shape: f32[2,1,32], index: 13, kind: input, shape index: {}]   ;;  %s3897_s14 = inlined_call_operand.vmem [shape: bf16[2,32,64], index: 14, kind: input, shape index: {}]   ;;  %s3898_s15 = inlined_call_operand.vmem [shape: f32[2,1,64], index: 15, kind: input, shape index: {}]   ;;  %s3899_s16 = inlined_call_operand.vmem [shape: bf16[2,64,32], index: 16, kind: input, shape index: {}]   ;;  %s3900_s17 = inlined_call_operand.vmem [shape: f32[2,1,32], index: 17, kind: input, shape index: {}]   ;;  %s3901_s18 = inlined_call_operand.vmem [shape: f32[2,1,32], index: 18, kind: input, shape index: {}]   ;;  %s3902_s19 = inlined_call_operand.vmem [shape: f32[2,1,32], index: 19, kind: input, shape index: {}]   ;;  %s3903_s20 = inlined_call_operand.hbm [shape: f32[2,8,32], index: 20, kind: output, shape index: {}]  }
   0x1   :  { %3911 = sst [smem:[#allocation10_spill]] %s3883_s0 }
   0x2   :  { %3912 = sst [smem:[#allocation11_spill]] %s3884_s1 }
   0x3   :  { %3913 = sst [smem:[#allocation12_spill]] %s3885_s2 }
   0x4   :  { %3914 = sst [smem:[#allocation13_spill]] %s3886_s3 }
   0x5   :  { %3915 = sst [smem:[#allocation14_spill]] %s3887_s4 }
   0x6   :  { %3916 = sst [smem:[#allocation15_spill]] %s3888_s5 }
   0x7   :  { %3917 = sst [smem:[#allocation16_spill]] %s3889_s6 }
   0x8   :  { %25 = vsyncpa [#allocation3], 0 }
   0x9   :  { %27 = vsyncpa [#allocation3 + $0x1], 0  ;;  %s3394_s1 = smov 0   ;;  %s3396_s22 = smov 0  }
   0xa   :  { %s3398_s23 = smov 0   ;;  %s3400_s24 = smov 0  }
   0xb LB: > { %3918 = sst [smem:[#allocation5_spill]] %s3272_s1  ;;  %s3415_s2 = sadd.s32 4294967295, %s3284_s24   ;;  %s3284_s24 = sphi %s3400_s24, %s3934_s24   ;;  %s3280_s23 = sphi %s3398_s23, %s3936_s23   ;;  %s3276_s22 = sphi %s3396_s22, %s3938_s22   ;;  %s3272_s1 = sphi %s3394_s1, %s3937_s1  }
   0xc   : > { %3919 = sst [smem:[#allocation6_spill]] %s3280_s23  ;;  %s2653_s25 = sadd.s32 4294967294, %s3284_s24  }
   0xd   : > { %s3419_s3 = sadd.s32 1, %s3284_s24   ;;  %s470_s26 = sadd.s32 1, %s3280_s23 }
   0xe   : > { %3920 = sst [smem:[#allocation7_spill]] %s3419_s3  ;;  %s467_s27 = ssub.s32 %s3284_s24, %s3419_s3 }
   0xf   : > { %p480_p0 = scmp.ne.s32.totalorder %s3280_s23, %s3276_s22  ;;  %p468_p1 = scmp.eq.s32.totalorder %s467_s27, 0 }
  0x10   : > { %p481_p2 = scmp.eq.s32.totalorder %s3415_s2, 1  ;;  %p486_p3 = scmp.ne.s32.totalorder %s3276_s22, %s3272_s1 }
  0x11   : > { %p487_p4 = scmp.eq.s32.totalorder %s2653_s25, 1  ;;  %p2656_p7 = scmp.ge.s32.totalorder %s3284_s24, 1 }
  0x12   : > { %s3430_s28 = scalar_select %p468_p1, %s3280_s23, %s470_s26  }
  0x13   : > { %p3432_p5 = por %p481_p2, %p480_p0  ;;  %p3436_p6 = por %p487_p4, %p486_p3 }
  0x14   : > { %3921 = sst [smem:[#allocation8_spill]] %s3430_s28  ;;  %p572_p8 = scmp.lt.s32.totalorder %s3284_s24, 3 }
  0x15   : > { %s3923_s29 = scalar_select %p3436_p6, 1, 0 }
  0x16   : > { %p573_p9 = pnand %p2656_p7, %p572_p8 }
  0x17   : > { %3924 = sst [smem:[#allocation9_spill]] %s3923_s29  ;;  %p632_p10 = scmp.lt.s32.totalorder (!%p573_p9), %s3415_s2, 1 }
  0x18   : > { %576 = sbr.rel (%p573_p9) target bundleno = 6119 (0x17e7), region = 100  ;;  %s3925_s26 = sld [smem:[#allocation11_spill]] (!%p573_p9) }
  0x19   : > { %s3926_s3 = sld [smem:[#allocation14_spill]] (!%p573_p9) }
  0x1a   : > { %s3927_s25 = sld [smem:[#allocation12_spill]] (!%p573_p9) }
  0x1b   : > { %s3929_s6 = sld [smem:[#allocation16_spill]] (!%p573_p9) }
  0x1c   : > { %s3930_s5 = sld [smem:[#allocation15_spill]] (!%p573_p9) }
  0x1d   : > { %s3444_s30 = scalar_select %p632_p10, %s3415_s2, 1  ;;  %vm647_vm0 = vcmask 261120   ;;  %v3155_v8 = vld [vmem:[%s3891_s8 + $0x8] sm:$0xff]   ;;  %v3286_v9 = vmov 0.0   ;;  %v3157_v11 = vld [vmem:[%s3891_s8] sm:$0xff]   ;;  %vm3287_vm1 = vmmov 0   ;;  %v872_v53 = vlaneseq }
  0x1e   : > { %2905 = vmatprep.subr.bf16.mxu1 %v3286_v9  ;;  %2921 = vmatprep.subr.bf16.mxu0 %v3286_v9  ;;  %v2669_v24 = vld [vmem:[%s3892_s9] ss:$0 sm:$0xff]  ;;  %vm941_vm2 = vcmask 1043456   ;;  %vm877_vm3 = vcmask 130048   ;;  %v3162_v49 = vld [vmem:[%s3891_s8 + $0x18] sm:$0xff]   ;;  %v3163_v50 = vld [vmem:[%s3891_s8 + $0x10] sm:$0xff]  }
  0x1f   : > { %s2658_s0 = sshll.u32 %s3444_s30, 3  ;;  %v3154_v7 = vld [vmem:[%s3926_s3 + $0x8] sm:$0xff]   ;;  %2922 = vmatpush3.bf16.msra.mxu0 %v3155_v8  ;;  %v3156_v10 = vld [vmem:[%s3926_s3] sm:$0xff]   ;;  %2909 = vmatprep.mubr.msk.bf16.mxu1 %vm3287_vm1, %v3286_v9  ;;  %v3160_v46 = vld [vmem:[%s3926_s3 + $0x18] sm:$0xff]   ;;  %s3931_s28 = sld [smem:[#allocation10_spill]]  ;;  %v873_v55 = vshrl.u32 %v872_v53, 7 }
  0x20   : > { %s638_s27 = scalar_lea.vmem %s3925_s26, %s2658_s0  ;;  %2906 = vmatpush3.bf16.msra.mxu1 %v3154_v7  ;;  %2923 = vmatprep.subr.bf16.mxu0 %v3286_v9  ;;  %v2659_v16 = vld [vmem:[%s3927_s25] ss:$0 sm:$0xff]  ;;  %s3928_s0 = sld [smem:[#allocation13_spill]]  ;;  %v3161_v48 = vld [vmem:[%s3926_s3 + $0x10] sm:$0xff]   ;;  %vm924_vm4 = vcmask 64512   ;;  %vm1546_vm5 = vcmask 523264  }
  0x21   : > { %v644_v0 = vld [vmem:[%s638_s27] sm:$0xff]  ;;  %2907 = vmatprep.subr.bf16.mxu1 %v3286_v9  ;;  %2925 = vmatprep.mubr.msk.bf16.mxu0 %vm3287_vm1, %v3286_v9  ;;  %v3158_v21 = vld [vmem:[%s3929_s6 + $0x8] sm:$0xff]   ;;  %v874_v57 = vsub.s32 0, %v873_v55  ;;  %s629_s25 = sand.u32 1, %s3276_s22  }
  0x22   : > { %v648_v1 = vsel %vm647_vm0, %v644_v0, 0.0  ;;  %v3159_v23 = vld [vmem:[%s3929_s6] sm:$0xff]   ;;  %s2657_s26 = sshll.u32 %s629_s25, 3 }
  0x23   : > { %649 = vadd.xlane.f32.xlu0 %v648_v1  ;;  %2924 = vmatpush3.bf16.msra.mxu0 %v3157_v11  ;;  %v2665_v36 = vld [vmem:[%s3890_s7] ss:$0 sm:$0xff] }
  0x24   : > { %2908 = vmatpush3.bf16.msra.mxu1 %v3156_v10  ;;  %2935 = vmatprep.subr.bf16.mxu0 %v3286_v9  ;;  %v2661_v41 = vld [vmem:[%s3930_s5] ss:$0 sm:$0xff] }
  0x25   : > { %2913 = vmatprep.subr.bf16.mxu1 %v3286_v9  ;;  %s634_s1 = scalar_lea.vmem %s3931_s28, %s3444_s30  ;;  %s2826_s28 = sshll.u32 %s3415_s2, 7 }
  0x26   : > { %v2660_v18 = vld [vmem:[%s3928_s0] ss:$0 sm:$0xff]  ;;  %s3288_s0 = smov [#allocation2]  }
  0x27   : > { %v640_v51 = vld [vmem:[%s634_s1] sm:$0x1]  ;;  %s631_s1 = scalar_lea.vmem [#allocation2], %s2657_s26  ;;  %s3228_s21 = sshll.u32 %s3288_s0, 4  ;;  %s3229_s21 = int_to_ptr.vmem [resolvable:$false] %s3228_s21 }
  0x28   : > { %v641_v52 = vcvt.s32.f32 %v640_v51  ;;  %s2585_s30 = sshll.u32 %s631_s1, 4  ;;  %s3230_s2 = scalar_lea.vmem %s3229_s21, 256  ;;  %s2586_s30 = int_to_ptr.vmem [resolvable:$true] %s2585_s30 }
  0x29   : > { %s3224_s27 = scalar_lea.vmem %s2586_s30, 128  ;;  %p3231_p0 = scmp.lt.s32.totalorder %s2586_s30, %s3229_s21 }
  0x2a   : > { %v642_v54 = vsub.f32 1.0, %v641_v52  ;;  %v3167_v52 = vld [vmem:[%s3893_s10 + $0x8] sm:$0xff]   ;;  %p3225_p11 = scmp.ne.s32.totalorder %s2586_s30, %s3224_s27  ;;  %p3232_p1 = scmp.lt.s32.totalorder %s3230_s2, %s3224_s27 }
  0x2c   : > { %v643_v56 = vmul.f32 -10000.0, %v642_v54  ;;  %p3226_p12 = pnand %p3225_p11, %p3432_p5  ;;  %p3233_p2 = por %p3232_p1, %p3231_p0 }
  0x2e   : > { %v3550_v58 = vrot.slane %v643_v56, %v874_v57  ;;  %v3166_v56 = vld [vmem:[%s3893_s10] sm:$0xff]   ;;  %p3227_p13 = pneg %p3226_p12 }
  0x30   : > { %p3234_p3 = pnand %p3233_p2, %p3227_p13 }
  0xac   : > { %v650_v2 = vpop.xlane.xlu0 %649 }
  0xad   : > { %v652_v3 = vmul.f32 0.03125, %v650_v2 }
  0xaf   : > { %v653_v4 = vsub.f32 %v644_v0, %v652_v3 }
  0xb1   : > { %v654_v5 = vmul.f32 %v653_v4, %v653_v4 }
  0xb3   : > { %v655_v6 = vsel %vm647_vm0, %v654_v5, 0.0  ;;  %v2698_v5 = vld [vmem:[%s3892_s9 + $0x1] ss:$0 sm:$0xff] }
  0xb4   : > { %656 = vadd.xlane.f32.xlu0 %v655_v6 }
 0x13d   : > { %v657_v12 = vpop.xlane.xlu0 %656 }
 0x13e   : > { %v658_v13 = vmul.f32 0.03125, %v657_v12 }
 0x140   : > { %v659_v14 = vadd.f32 1e-12, %v658_v13 }
 0x142   : > { %3194 = vrsqrt.f32 %v659_v14 }
 0x14f   : > { %v3195_v15 = vpop.eup %3194 }
 0x150   : > { %v661_v17 = vmul.f32 %v3195_v15, %v653_v4 }
 0x152   : > { %v668_v19 = vmul.f32 %v2659_v16, %v661_v17 }
 0x154   : > { %v3480_v20 = vadd.f32 %v2660_v18, %v668_v19 }
 0x156   : > { %v3487_v22 = vpack.c.bf16 %v3480_v20, %v3480_v20 }
 0x158   : > { %2910 = vmatmul.mubr.msk.bf16.vlgmr.msra.gmra.mxu1 %vm647_vm0, %v3487_v22  ;;  %2926 = vmatmul.mubr.msk.bf16.vlgmr.msra.gmra.mxu0 %vm647_vm0, %v3487_v22 }
 0x159   : > { %2914 = vmatpush3.bf16.msra.mxu1 %v3158_v21  ;;  %2917 = vmatprep.mubr.msk.bf16.mxu1 %vm3287_vm1, %v3286_v9 }
 0x15a   : > { %2915 = vmatprep.subr.bf16.mxu1 %v3286_v9  ;;  %2937 = vmatprep.mubr.msk.bf16.mxu0 %vm3287_vm1, %v3286_v9 }
 0x15d   : > { %2916 = vmatpush3.bf16.msra.mxu1 %v3159_v23 }
 0x15e   : > { %2929 = vmatprep.subr.bf16.mxu1 %v3286_v9 }
 0x160   : > { %2918 = vmatmul.mubr.msk.bf16.vlgmr.msra.gmra.mxu1 %vm647_vm0, %v3487_v22 }
 0x161   : > { %2931 = vmatprep.mubr.msk.bf16.mxu1 %vm3287_vm1, %v3286_v9 }
 0x218   : > { %v737_v25 = vpop.f32.mrf.mxu1  ;;  %v863_v26 = vpop.f32.mrf.mxu0 }
 0x219   : > { %v864_v27 = vadd.f32 %v2669_v24, %v863_v26  ;;  %v738_v45 = vadd.f32 %v2661_v41, %v737_v25  ;;  %v3164_v24 = vld [vmem:[%s3929_s6 + $0x18] sm:$0xff]   ;;  %v3165_v26 = vld [vmem:[%s3929_s6 + $0x10] sm:$0xff]  }
 0x21a   : > { %v2911_v28 = vpop.f32.mrf.mxu1  ;;  %v2927_v29 = vpop.f32.mrf.mxu0 }
 0x21b   : > { %v937_v30 = vpack.c.bf16 %v864_v27, %v864_v27  ;;  %v869_v47 = vpack.c.bf16 %v738_v45, %v738_v45 }
 0x21c   : > { %v740_v31 = vpop.f32.mrf.mxu1  ;;  %v866_v32 = vpop.f32.mrf.mxu0 }
 0x21d   : > { %v943_v33 = vsel %vm941_vm2, %v937_v30, 0  ;;  %v2689_v31 = vld [vmem:[%s3890_s7 + $0x1] ss:$0 sm:$0xff] }
 0x21e   : > { %v2912_v34 = vpop.f32.mrf.mxu1  ;;  %v2928_v35 = vpop.f32.mrf.mxu0  ;;  %2936 = vmatpush3.bf16.msra.mxu0 %v943_v33 }
 0x21f   : > { %2949 = vmatprep.subr.bf16.mxu0 %v3286_v9 }
 0x220   : > { %v800_v37 = vpop.f32.mrf.mxu1 }
 0x221   : > { %v801_v38 = vadd.f32 %v2665_v36, %v800_v37  ;;  %v2680_v36 = vld [vmem:[%s3930_s5 + $0x1] ss:$0 sm:$0xff] }
 0x222   : > { %v2919_v39 = vpop.f32.mrf.mxu1 }
 0x223   : > { %v870_v40 = vpack.c.bf16 %v801_v38, %v801_v38 }
 0x224   : > { %v803_v42 = vpop.f32.mrf.mxu1 }
 0x225   : > { %v882_v43 = vsel %vm877_vm3, %v870_v40, 0 }
 0x226   : > { %v2920_v44 = vpop.f32.mrf.mxu1  ;;  %2930 = vmatpush3.bf16.xpose.msra.mxu1 %v882_v43 }
 0x227   : > { %2941 = vmatprep.subr.bf16.mxu1 %v3286_v9 }
 0x22d   : > { %2932 = vmatmul.mubr.msk.bf16.vlgmr.msra.gmra.mxu1 %vm877_vm3, %v869_v47 }
 0x22e   : > { %2942 = vmatpush3.bf16.msra.mxu1 %v3160_v46  ;;  %2945 = vmatprep.mubr.msk.bf16.mxu1 %vm3287_vm1, %v3286_v9 }
 0x22f   : > { %2943 = vmatprep.subr.bf16.mxu1 %v3286_v9 }
 0x232   : > { %2944 = vmatpush3.bf16.msra.mxu1 %v3161_v48 }
 0x233   : > { %2957 = vmatprep.subr.bf16.mxu1 %v3286_v9 }
 0x235   : > { %2946 = vmatmul.mubr.msk.bf16.vlgmr.msra.gmra.mxu1 %vm647_vm0, %v3487_v22 }
 0x236   : > { %2958 = vmatpush3.bf16.msra.mxu1 %v3162_v49  ;;  %2961 = vmatprep.mubr.msk.bf16.mxu1 %vm3287_vm1, %v3286_v9 }
 0x237   : > { %2959 = vmatprep.subr.bf16.mxu1 %v3286_v9 }
 0x23a   : > { %2960 = vmatpush3.bf16.msra.mxu1 %v3163_v50 }
 0x23b   : > { %2971 = vmatprep.subr.bf16.mxu1 %v3286_v9 }
 0x23d   : > { %2962 = vmatmul.mubr.msk.bf16.vlgmr.msra.gmra.mxu1 %vm647_vm0, %v3487_v22 }
 0x23e   : > { %2973 = vmatprep.mubr.msk.bf16.mxu1 %vm3287_vm1, %v3286_v9 }
 0x2ed   : > { %v918_v59 = vpop.f32.mrf.mxu1 }
 0x2ee   : > { %v919_v60 = vadd.f32 %v918_v59, %v3550_v58 }
 0x2ef   : > { %v2933_v61 = vpop.f32.mrf.mxu1 }
 0x2f0   : > { %v925_v62 = vsel %vm924_vm4, %v919_v60, -inf }
 0x2f1   : > { %v921_v63 = vpop.f32.mrf.mxu1  ;;  %926 = vmax.xlane.f32.xlu1 %v925_v62 }
 0x2f3   : > { %v2934_v0 = vpop.f32.mrf.mxu1 }
 0x2f5   : > { %v1047_v1 = vpop.f32.mrf.mxu1 }
 0x2f6   : > { %v1048_v39 = vadd.f32 %v2680_v36, %v1047_v1  ;;  %v3173_v36 = vld [vmem:[%s3899_s16] sm:$0xff]  }
 0x2f7   : > { %v2947_v2 = vpop.f32.mrf.mxu1 }
 0x2f8   : > { %v1183_v40 = vpack.c.bf16 %v1048_v39, %v1048_v39 }
 0x2f9   : > { %v1050_v3 = vpop.f32.mrf.mxu1 }
 0x2fb   : > { %v2948_v4 = vpop.f32.mrf.mxu1 }
 0x2fd   : > { %v1177_v6 = vpop.f32.mrf.mxu1 }
 0x2fe   : > { %v1178_v7 = vadd.f32 %v2698_v5, %v1177_v6  ;;  %v2710_v6 = vld [vmem:[%s3894_s11] ss:$0 sm:$0xff] }
 0x2ff   : > { %v2963_v8 = vpop.f32.mrf.mxu1 }
 0x300   : > { %v1243_v10 = vpack.c.bf16 %v1178_v7, %v1178_v7 }
 0x301   : > { %v1180_v11 = vpop.f32.mrf.mxu1 }
 0x302   : > { %v1248_v12 = vsel %vm941_vm2, %v1243_v10, 0 }
 0x303   : > { %v2964_v13 = vpop.f32.mrf.mxu1  ;;  %2972 = vmatpush3.bf16.msra.mxu1 %v1248_v12 }
 0x304   : > { %2983 = vmatprep.subr.bf16.mxu1 %v3286_v9 }
 0x37a   : > { %v927_v14 = vpop.xlane.xlu1 %926 }
 0x37b   : > { %v928_v15 = vsub.f32 %v919_v60, %v927_v14 }
 0x37d   : > { %v929_v16 = vmul.f32 1.442695, %v928_v15 }
 0x37f   : > { %3196 = vpow2.f32 %v929_v16 }
 0x38c   : > { %v3197_v17 = vpop.eup %3196 }
 0x38d   : > { %v931_v18 = vsel %vm924_vm4, %v3197_v17, 0.0 }
 0x38e   : > { %932 = vadd.xlane.f32.xlu1 %v931_v18 }
 0x417   : > { %v933_v19 = vpop.xlane.xlu1 %932 }
 0x418   : > { %3198 = vrcp.f32 %v933_v19 }
 0x425   : > { %v3199_v21 = vpop.eup %3198 }
 0x426   : > { %v935_v23 = vmul.f32 %v3199_v21, %v3197_v17  ;;  %v3168_v21 = vld [vmem:[%s3897_s14 + $0x8] sm:$0xff]  }
 0x428   : > { %v936_v25 = vpack.c.bf16 %v935_v23, %v935_v23 }
 0x42a   : > { %2938 = vmatmul.mubr.msk.bf16.vlgmr.msra.gmra.mxu0 %vm924_vm4, %v936_v25 }
 0x42b   : > { %2950 = vmatpush3.bf16.msra.mxu0 %v3164_v24  ;;  %2953 = vmatprep.mubr.msk.bf16.mxu0 %vm3287_vm1, %v3286_v9 }
 0x42c   : > { %2951 = vmatprep.subr.bf16.mxu0 %v3286_v9 }
 0x42f   : > { %2952 = vmatpush3.bf16.msra.mxu0 %v3165_v26 }
 0x430   : > { %2965 = vmatprep.subr.bf16.mxu0 %v3286_v9 }
 0x432   : > { %2954 = vmatmul.mubr.msk.bf16.vlgmr.msra.gmra.mxu0 %vm647_vm0, %v3487_v22 }
 0x433   : > { %2967 = vmatprep.mubr.msk.bf16.mxu0 %vm3287_vm1, %v3286_v9 }
 0x4ea   : > { %v979_v27 = vpop.f32.mrf.mxu0 }
 0x4eb   : > { %v985_v59 = vpack.c.bf16 %v979_v27, %v979_v27  ;;  %v2711_v27 = vld [vmem:[%s3895_s12] ss:$0 sm:$0xff] }
 0x4ec   : > { %v2939_v28 = vpop.f32.mrf.mxu0 }
 0x4ee   : > { %v982_v29 = vpop.f32.mrf.mxu0 }
 0x4ef   : > { %v2712_v29 = vld [vmem:[%s3896_s13] ss:$0 sm:$0xff] }
 0x4f0   : > { %v2940_v30 = vpop.f32.mrf.mxu0 }
 0x4f2   : > { %v1112_v32 = vpop.f32.mrf.mxu0 }
 0x4f3   : > { %v1113_v33 = vadd.f32 %v2689_v31, %v1112_v32 }
 0x4f4   : > { %v2955_v34 = vpop.f32.mrf.mxu0 }
 0x4f5   : > { %v1184_v35 = vpack.c.bf16 %v1113_v33, %v1113_v33  ;;  %v3170_v33 = vld [vmem:[%s3899_s16 + $0x18] sm:$0xff]   ;;  %v3171_v34 = vld [vmem:[%s3899_s16 + $0x10] sm:$0xff]  }
 0x4f6   : > { %v1115_v22 = vpop.f32.mrf.mxu0 }
 0x4f7   : > { %v1189_v37 = vsel %vm877_vm3, %v1184_v35, 0  ;;  %v3172_v35 = vld [vmem:[%s3899_s16 + $0x8] sm:$0xff]   ;;  %v2713_v22 = vld [vmem:[%s3898_s15] ss:$0 sm:$0xff] }
 0x4f8   : > { %v2956_v38 = vpop.f32.mrf.mxu0  ;;  %2966 = vmatpush3.bf16.xpose.msra.mxu0 %v1189_v37 }
 0x4f9   : > { %2977 = vmatprep.subr.bf16.mxu0 %v3286_v9 }
 0x4ff   : > { %2968 = vmatmul.mubr.msk.bf16.vlgmr.msra.gmra.mxu0 %vm877_vm3, %v1183_v40 }
 0x500   : > { %2979 = vmatprep.mubr.msk.bf16.mxu0 %vm3287_vm1, %v3286_v9  ;;  %2978 = vmatpush3.bf16.msra.mxu0 %v3167_v52  ;;  %v2717_v52 = vld [vmem:[%s3900_s17] ss:$0 sm:$0xff] }
 0x501   : > { %2989 = vmatprep.subr.bf16.mxu0 %v3286_v9 }
 0x5bf   : > { %v1225_v41 = vpop.f32.mrf.mxu0 }
 0x5c0   : > { %v1226_v42 = vadd.f32 %v1225_v41, %v3550_v58 }
 0x5c1   : > { %v2969_v43 = vpop.f32.mrf.mxu0 }
 0x5c2   : > { %v1231_v44 = vsel %vm924_vm4, %v1226_v42, -inf }
 0x5c3   : > { %1232 = vmax.xlane.f32.xlu0 %v1231_v44  ;;  %v1228_v45 = vpop.f32.mrf.mxu0 }
 0x5c5   : > { %v2970_v46 = vpop.f32.mrf.mxu0 }
 0x64c   : > { %v1233_v47 = vpop.xlane.xlu0 %1232 }
 0x64d   : > { %v1234_v48 = vsub.f32 %v1226_v42, %v1233_v47 }
 0x64f   : > { %v1235_v49 = vmul.f32 1.442695, %v1234_v48 }
 0x651   : > { %3200 = vpow2.f32 %v1235_v49 }
 0x65e   : > { %v3201_v50 = vpop.eup %3200 }
 0x65f   : > { %v1237_v51 = vsel %vm924_vm4, %v3201_v50, 0.0 }
 0x660   : > { %1238 = vadd.xlane.f32.xlu1 %v1237_v51 }
 0x6e9   : > { %v1239_v53 = vpop.xlane.xlu1 %1238 }
 0x6ea   : > { %3202 = vrcp.f32 %v1239_v53 }
 0x6f7   : > { %v3203_v54 = vpop.eup %3202 }
 0x6f8   : > { %v1241_v55 = vmul.f32 %v3203_v54, %v3201_v50 }
 0x6fa   : > { %v1242_v57 = vpack.c.bf16 %v1241_v55, %v1241_v55 }
 0x6fc   : > { %2974 = vmatmul.mubr.msk.bf16.vlgmr.msra.gmra.mxu1 %vm924_vm4, %v1242_v57 }
 0x6fd   : > { %2984 = vmatpush3.bf16.msra.mxu1 %v3166_v56  ;;  %2985 = vmatprep.mubr.msk.bf16.mxu1 %vm3287_vm1, %v3286_v9 }
 0x6fe   : > { %2997 = vmatprep.subr.bf16.mxu1 %v3286_v9 }
 0x704   : > { %2986 = vmatmul.mubr.msk.bf16.vlgmr.msra.gmra.mxu1 %vm877_vm3, %v985_v59 }
 0x705   : > { %3005 = vmatprep.mubr.msk.bf16.mxu1 %vm3287_vm1, %v3286_v9  ;;  %2998 = vmatpush3.bf16.msra.mxu1 %v3170_v33 }
 0x706   : > { %2999 = vmatprep.subr.bf16.mxu1 %v3286_v9 }
 0x709   : > { %3000 = vmatpush3.bf16.msra.mxu1 %v3171_v34 }
 0x70a   : > { %3001 = vmatprep.subr.bf16.mxu1 %v3286_v9 }
 0x70d   : > { %3002 = vmatpush3.bf16.msra.mxu1 %v3172_v35 }
 0x70e   : > { %3003 = vmatprep.subr.bf16.mxu1 %v3286_v9 }
 0x711   : > { %3004 = vmatpush3.bf16.msra.mxu1 %v3173_v36 }
 0x712   : > { %3025 = vmatprep.subr.bf16.mxu1 %v3286_v9 }
 0x7bc   : > { %v1284_v60 = vpop.f32.mrf.mxu1 }
 0x7bd   : > { %v1290_v61 = vpack.c.bf16 %v1284_v60, %v1284_v60 }
 0x7be   : > { %v2975_v62 = vpop.f32.mrf.mxu1 }
 0x7bf   : > { %2980 = vmatmul.mubr.msk.bf16.vlgmr.msra.gmra.mxu0 %vm877_vm3, %v1290_v61 }
 0x7c0   : > { %v1287_v63 = vpop.f32.mrf.mxu1  ;;  %2993 = vmatprep.mubr.msk.bf16.mxu0 %vm3287_vm1, %v3286_v9  ;;  %2990 = vmatpush3.bf16.msra.mxu0 %v3168_v21 }
 0x7c1   : > { %2991 = vmatprep.subr.bf16.mxu0 %v3286_v9 }
 0x7c2   : > { %v2976_v0 = vpop.f32.mrf.mxu1 }
 0x7c4   : > { %v1386_v1 = vpop.f32.mrf.mxu1 }
 0x7c6   : > { %v2987_v2 = vpop.f32.mrf.mxu1 }
 0x7c7   : > { %v3174_v2 = vld [vmem:[%s3926_s3 + $0x28] sm:$0xff]  }
 0x7c8   : > { %v1389_v3 = vpop.f32.mrf.mxu1 }
 0x7c9   : > { %v3175_v3 = vld [vmem:[%s3891_s8 + $0x28] sm:$0xff]  }
 0x7ca   : > { %v2988_v4 = vpop.f32.mrf.mxu1 }
 0x7cb   : > { %v3176_v4 = vld [vmem:[%s3926_s3 + $0x20] sm:$0xff]  }
 0x87f   : > { %v1337_v5 = vpop.f32.mrf.mxu0 }
 0x880   : > { %v1387_v7 = vadd.f32 %v1386_v1, %v1337_v5  ;;  %v3177_v5 = vld [vmem:[%s3891_s8 + $0x20] sm:$0xff]  }
 0x881   : > { %v2981_v8 = vpop.f32.mrf.mxu0 }
 0x882   : > { %v1399_v10 = vadd.f32 %v2710_v6, %v1387_v7 }
 0x883   : > { %v1340_v11 = vpop.f32.mrf.mxu0 }
 0x884   : > { %v1400_v12 = vadd.f32 %v1399_v10, %v3480_v20  ;;  %v3169_v20 = vld [vmem:[%s3897_s14] sm:$0xff]  }
 0x885   : > { %v2982_v13 = vpop.f32.mrf.mxu0  ;;  %2992 = vmatpush3.bf16.msra.mxu0 %v3169_v20  ;;  %v2723_v11 = vld [vmem:[%s3901_s18] ss:$0 sm:$0xff] }
 0x886   : > { %v1403_v14 = vsel %vm647_vm0, %v1400_v12, 0.0  ;;  %3009 = vmatprep.subr.bf16.mxu0 %v3286_v9  ;;  %v2724_v13 = vld [vmem:[%s3902_s19] ss:$0 sm:$0xff] }
 0x887   : > { %1404 = vadd.xlane.f32.xlu0 %v1403_v14 }
 0x910   : > { %v1405_v15 = vpop.xlane.xlu0 %1404 }
 0x911   : > { %v1406_v16 = vmul.f32 0.03125, %v1405_v15 }
 0x913   : > { %v1407_v17 = vsub.f32 %v1400_v12, %v1406_v16  ;;  %v3178_v16 = vld [vmem:[%s3929_s6 + $0x28] sm:$0xff]  }
 0x915   : > { %v1408_v18 = vmul.f32 %v1407_v17, %v1407_v17 }
 0x917   : > { %v1409_v19 = vsel %vm647_vm0, %v1408_v18, 0.0  ;;  %v3179_v18 = vld [vmem:[%s3929_s6 + $0x20] sm:$0xff]  }
 0x918   : > { %1410 = vadd.xlane.f32.xlu1 %v1409_v19  ;;  %v2748_v19 = vld [vmem:[%s3892_s9 + $0x2] ss:$0 sm:$0xff] }
 0x9a1   : > { %v1411_v23 = vpop.xlane.xlu1 %1410 }
 0x9a2   : > { %v1412_v24 = vmul.f32 0.03125, %v1411_v23 }
 0x9a4   : > { %v1413_v25 = vadd.f32 1e-12, %v1412_v24 }
 0x9a6   : > { %3204 = vrsqrt.f32 %v1413_v25 }
 0x9b3   : > { %v3205_v26 = vpop.eup %3204 }
 0x9b4   : > { %v1415_v28 = vmul.f32 %v3205_v26, %v1407_v17 }
 0x9b6   : > { %v1422_v30 = vmul.f32 %v2711_v27, %v1415_v28 }
 0x9b8   : > { %v1429_v31 = vadd.f32 %v2712_v29, %v1422_v30 }
 0x9ba   : > { %v1430_v32 = vpack.c.bf16 %v1429_v31, %v1429_v31 }
 0x9bc   : > { %2994 = vmatmul.mubr.msk.bf16.vlgmr.msra.gmra.mxu0 %vm647_vm0, %v1430_v32  ;;  %v2739_v32 = vld [vmem:[%s3890_s7 + $0x2] ss:$0 sm:$0xff] }
 0x9bd   : > { %3013 = vmatprep.mubr.msk.bf16.mxu0 %vm3287_vm1, %v3286_v9  ;;  %3010 = vmatpush3.bf16.msra.mxu0 %v3174_v2 }
 0x9be   : > { %3011 = vmatprep.subr.bf16.mxu0 %v3286_v9 }
 0x9c1   : > { %3012 = vmatpush3.bf16.msra.mxu0 %v3176_v4 }
 0x9c2   : > { %3017 = vmatprep.subr.bf16.mxu0 %v3286_v9 }
 0xa7c   : > { %v1491_v37 = vpop.f32.mrf.mxu0 }
 0xa7d   : > { %v1492_v38 = vadd.f32 %v2713_v22, %v1491_v37  ;;  %v2730_v22 = vld [vmem:[%s3930_s5 + $0x2] ss:$0 sm:$0xff] }
 0xa7e   : > { %v2995_v39 = vpop.f32.mrf.mxu0 }
 0xa7f   : > { %v1497_v40 = vmul.f32 %v1492_v38, %v1492_v38 }
 0xa80   : > { %v1494_v41 = vpop.f32.mrf.mxu0 }
 0xa81   : > { %v1498_v42 = vmul.f32 %v1497_v40, %v1492_v38  ;;  %v3180_v41 = vld [vmem:[%s3926_s3 + $0x38] sm:$0xff]  }
 0xa82   : > { %v2996_v43 = vpop.f32.mrf.mxu0 }
 0xa83   : > { %v1499_v44 = vmul.f32 0.044715, %v1498_v42  ;;  %v3181_v43 = vld [vmem:[%s3926_s3 + $0x30] sm:$0xff]  }
 0xa85   : > { %v1500_v45 = vadd.f32 %v1499_v44, %v1492_v38  ;;  %v3182_v44 = vld [vmem:[%s3891_s8 + $0x38] sm:$0xff]  }
 0xa87   : > { %v1501_v46 = vmul.f32 0.7978846, %v1500_v45  ;;  %v3183_v45 = vld [vmem:[%s3891_s8 + $0x30] sm:$0xff]  }
 0xa89   : > { %3206 = vtanh.f32 %v1501_v46 }
 0xa96   : > { %v3207_v47 = vpop.eup %3206 }
 0xa97   : > { %v1503_v48 = vadd.f32 1.0, %v3207_v47 }
 0xa99   : > { %v1504_v49 = vmul.f32 0.5, %v1503_v48 }
 0xa9b   : > { %v1505_v50 = vmul.f32 %v1504_v49, %v1492_v38 }
 0xa9d   : > { %v1506_v51 = vpack.c.bf16 %v1505_v50, %v1505_v50 }
 0xa9f   : > { %3006 = vmatmul.mubr.msk.bf16.vlgmr.msra.gmra.mxu1 %vm1546_vm5, %v1506_v51 }
 0xaa0   : > { %3029 = vmatprep.mubr.msk.bf16.mxu1 %vm3287_vm1, %v3286_v9  ;;  %3026 = vmatpush3.bf16.msra.mxu1 %v3175_v3 }
 0xaa1   : > { %3027 = vmatprep.subr.bf16.mxu1 %v3286_v9 }
 0xaa4   : > { %3028 = vmatpush3.bf16.msra.mxu1 %v3177_v5 }
 0xaa5   : > { %3039 = vmatprep.subr.bf16.mxu1 %v3286_v9 }
 0xb5f   : > { %v1584_v53 = vpop.f32.mrf.mxu1 }
 0xb60   : > { %v1585_v54 = vadd.f32 %v2717_v52, %v1584_v53 }
 0xb61   : > { %v3007_v55 = vpop.f32.mrf.mxu1 }
 0xb62   : > { %v1590_v56 = vadd.f32 %v1585_v54, %v1429_v31 }
 0xb63   : > { %v1587_v57 = vpop.f32.mrf.mxu1 }
 0xb64   : > { %v1593_v59 = vsel %vm647_vm0, %v1590_v56, 0.0 }
 0xb65   : > { %1594 = vadd.xlane.f32.xlu0 %v1593_v59  ;;  %v3008_v60 = vpop.f32.mrf.mxu1 }
 0xbee   : > { %v1595_v61 = vpop.xlane.xlu0 %1594 }
 0xbef   : > { %v1596_v62 = vmul.f32 0.03125, %v1595_v61 }
 0xbf1   : > { %v1597_v63 = vsub.f32 %v1590_v56, %v1596_v62  ;;  %v2779_v56 = vld [vmem:[%s3892_s9 + $0x3] ss:$0 sm:$0xff] }
 0xbf3   : > { %v1598_v0 = vmul.f32 %v1597_v63, %v1597_v63 }
 0xbf5   : > { %v1599_v1 = vsel %vm647_vm0, %v1598_v0, 0.0 }
 0xbf6   : > { %1600 = vadd.xlane.f32.xlu1 %v1599_v1 }
 0xc7f   : > { %v1601_v6 = vpop.xlane.xlu1 %1600 }
 0xc80   : > { %v1602_v7 = vmul.f32 0.03125, %v1601_v6 }
 0xc82   : > { %v1603_v8 = vadd.f32 1e-12, %v1602_v7 }
 0xc84   : > { %3208 = vrsqrt.f32 %v1603_v8 }
 0xc91   : > { %v3209_v10 = vpop.eup %3208 }
 0xc92   : > { %v1605_v12 = vmul.f32 %v3209_v10, %v1597_v63  ;;  %v3184_v10 = vld [vmem:[%s3929_s6 + $0x38] sm:$0xff]  }
 0xc94   : > { %v1612_v14 = vmul.f32 %v2723_v11, %v1605_v12  ;;  %v3185_v12 = vld [vmem:[%s3929_s6 + $0x30] sm:$0xff]   ;;  %s2572_s6 = scalar_lea.sflag [#allocation3], %s629_s25 }
 0xc96   : > { %v3678_v15 = vadd.f32 %v2724_v13, %v1612_v14 }
 0xc98   : > { %v3685_v17 = vpack.c.bf16 %v3678_v15, %v3678_v15 }
 0xc9a   : > { %3014 = vmatmul.mubr.msk.bf16.vlgmr.msra.gmra.mxu0 %vm647_vm0, %v3685_v17  ;;  %3030 = vmatmul.mubr.msk.bf16.vlgmr.msra.gmra.mxu1 %vm647_vm0, %v3685_v17 }
 0xc9b   : > { %3018 = vmatpush3.bf16.msra.mxu0 %v3178_v16  ;;  %3021 = vmatprep.mubr.msk.bf16.mxu0 %vm3287_vm1, %v3286_v9 }
 0xc9c   : > { %3019 = vmatprep.subr.bf16.mxu0 %v3286_v9  ;;  %3041 = vmatprep.mubr.msk.bf16.mxu1 %vm3287_vm1, %v3286_v9 }
 0xc9f   : > { %3020 = vmatpush3.bf16.msra.mxu0 %v3179_v18 }
 0xca0   : > { %3033 = vmatprep.subr.bf16.mxu0 %v3286_v9 }
 0xca2   : > { %3022 = vmatmul.mubr.msk.bf16.vlgmr.msra.gmra.mxu0 %vm647_vm0, %v3685_v17 }
 0xca3   : > { %3035 = vmatprep.mubr.msk.bf16.mxu0 %vm3287_vm1, %v3286_v9 }
 0xd5a   : > { %v1683_v21 = vpop.f32.mrf.mxu0  ;;  %v1813_v20 = vpop.f32.mrf.mxu1 }
 0xd5b   : > { %v1814_v23 = vadd.f32 %v2748_v19, %v1813_v20  ;;  %v1684_v40 = vadd.f32 %v2730_v22, %v1683_v21  ;;  %v2770_v19 = vld [vmem:[%s3890_s7 + $0x3] ss:$0 sm:$0xff] }
 0xd5c   : > { %v3015_v24 = vpop.f32.mrf.mxu0  ;;  %v3031_v25 = vpop.f32.mrf.mxu1 }
 0xd5d   : > { %v1879_v26 = vpack.c.bf16 %v1814_v23, %v1814_v23  ;;  %v1819_v42 = vpack.c.bf16 %v1684_v40, %v1684_v40  ;;  %v2761_v25 = vld [vmem:[%s3930_s5 + $0x3] ss:$0 sm:$0xff]  ;;  %v3187_v40 = vld [vmem:[%s3893_s10 + $0x18] sm:$0xff]   ;;  %s2583_s5 = scalar_lea.hbm %s3903_s20, %s2826_s28 }
 0xd5e   : > { %v1686_v27 = vpop.f32.mrf.mxu0  ;;  %v1816_v28 = vpop.f32.mrf.mxu1 }
 0xd5f   : > { %v1884_v29 = vsel %vm941_vm2, %v1879_v26, 0 }
 0xd60   : > { %v3016_v30 = vpop.f32.mrf.mxu0  ;;  %v3032_v31 = vpop.f32.mrf.mxu1  ;;  %3040 = vmatpush3.bf16.msra.mxu1 %v1884_v29 }
 0xd61   : > { %3053 = vmatprep.subr.bf16.mxu1 %v3286_v9 }
 0xd62   : > { %v1748_v33 = vpop.f32.mrf.mxu0 }
 0xd63   : > { %v1749_v34 = vadd.f32 %v2739_v32, %v1748_v33 }
 0xd64   : > { %v3023_v35 = vpop.f32.mrf.mxu0 }
 0xd65   : > { %v1820_v36 = vpack.c.bf16 %v1749_v34, %v1749_v34 }
 0xd66   : > { %v1751_v37 = vpop.f32.mrf.mxu0 }
 0xd67   : > { %v1825_v38 = vsel %vm877_vm3, %v1820_v36, 0 }
 0xd68   : > { %v3024_v39 = vpop.f32.mrf.mxu0  ;;  %3034 = vmatpush3.bf16.xpose.msra.mxu0 %v1825_v38 }
 0xd69   : > { %3045 = vmatprep.subr.bf16.mxu0 %v3286_v9 }
 0xd6f   : > { %3036 = vmatmul.mubr.msk.bf16.vlgmr.msra.gmra.mxu0 %vm877_vm3, %v1819_v42 }
 0xd70   : > { %3046 = vmatpush3.bf16.msra.mxu0 %v3180_v41  ;;  %3049 = vmatprep.mubr.msk.bf16.mxu0 %vm3287_vm1, %v3286_v9 }
 0xd71   : > { %3047 = vmatprep.subr.bf16.mxu0 %v3286_v9 }
 0xd74   : > { %3048 = vmatpush3.bf16.msra.mxu0 %v3181_v43  ;;  %v3186_v43 = vld [vmem:[%s3893_s10 + $0x10] sm:$0xff]  }
 0xd75   : > { %3061 = vmatprep.subr.bf16.mxu0 %v3286_v9 }
 0xd77   : > { %3050 = vmatmul.mubr.msk.bf16.vlgmr.msra.gmra.mxu0 %vm647_vm0, %v3685_v17 }
 0xd78   : > { %3062 = vmatpush3.bf16.msra.mxu0 %v3182_v44  ;;  %3065 = vmatprep.mubr.msk.bf16.mxu0 %vm3287_vm1, %v3286_v9 }
 0xd79   : > { %3063 = vmatprep.subr.bf16.mxu0 %v3286_v9 }
 0xd7c   : > { %3064 = vmatpush3.bf16.msra.mxu0 %v3183_v45 }
 0xd7d   : > { %3075 = vmatprep.subr.bf16.mxu0 %v3286_v9 }
 0xd7f   : > { %3066 = vmatmul.mubr.msk.bf16.vlgmr.msra.gmra.mxu0 %vm647_vm0, %v3685_v17 }
 0xd80   : > { %3077 = vmatprep.mubr.msk.bf16.mxu0 %vm3287_vm1, %v3286_v9 }
 0xe2f   : > { %v1861_v46 = vpop.f32.mrf.mxu0 }
 0xe30   : > { %v1862_v47 = vadd.f32 %v1861_v46, %v3550_v58 }
 0xe31   : > { %v3037_v48 = vpop.f32.mrf.mxu0 }
 0xe32   : > { %v1867_v49 = vsel %vm924_vm4, %v1862_v47, -inf }
 0xe33   : > { %1868 = vmax.xlane.f32.xlu0 %v1867_v49  ;;  %v1864_v50 = vpop.f32.mrf.mxu0 }
 0xe35   : > { %v3038_v51 = vpop.f32.mrf.mxu0 }
 0xe37   : > { %v1989_v52 = vpop.f32.mrf.mxu0 }
 0xe38   : > { %v1990_v28 = vadd.f32 %v2761_v25, %v1989_v52  ;;  %v2802_v25 = vld [vmem:[%s3898_s15 + $0x1] ss:$0 sm:$0xff] }
 0xe39   : > { %v3051_v53 = vpop.f32.mrf.mxu0 }
 0xe3a   : > { %v2125_v29 = vpack.c.bf16 %v1990_v28, %v1990_v28 }
 0xe3b   : > { %v1992_v54 = vpop.f32.mrf.mxu0 }
 0xe3d   : > { %v3052_v55 = vpop.f32.mrf.mxu0 }
 0xe3f   : > { %v2119_v57 = vpop.f32.mrf.mxu0 }
 0xe40   : > { %v2120_v59 = vadd.f32 %v2779_v56, %v2119_v57  ;;  %v2792_v56 = vld [vmem:[%s3894_s11 + $0x1] ss:$0 sm:$0xff] }
 0xe41   : > { %v3067_v60 = vpop.f32.mrf.mxu0 }
 0xe42   : > { %v2185_v61 = vpack.c.bf16 %v2120_v59, %v2120_v59 }
 0xe43   : > { %v2122_v62 = vpop.f32.mrf.mxu0 }
 0xe44   : > { %v2190_v63 = vsel %vm941_vm2, %v2185_v61, 0 }
 0xe45   : > { %v3068_v0 = vpop.f32.mrf.mxu0  ;;  %3076 = vmatpush3.bf16.msra.mxu0 %v2190_v63 }
 0xe46   : > { %3087 = vmatprep.subr.bf16.mxu0 %v3286_v9 }
 0xebc   : > { %v1869_v1 = vpop.xlane.xlu0 %1868 }
 0xebd   : > { %v1870_v2 = vsub.f32 %v1862_v47, %v1869_v1 }
 0xebf   : > { %v1871_v3 = vmul.f32 1.442695, %v1870_v2 }
 0xec1   : > { %3210 = vpow2.f32 %v1871_v3 }
 0xece   : > { %v3211_v4 = vpop.eup %3210 }
 0xecf   : > { %v1873_v5 = vsel %vm924_vm4, %v3211_v4, 0.0 }
 0xed0   : > { %1874 = vadd.xlane.f32.xlu1 %v1873_v5 }
 0xf59   : > { %v1875_v6 = vpop.xlane.xlu1 %1874 }
 0xf5a   : > { %3212 = vrcp.f32 %v1875_v6  ;;  %v3188_v6 = vld [vmem:[%s3897_s14 + $0x18] sm:$0xff]  }
 0xf67   : > { %v3213_v7 = vpop.eup %3212 }
 0xf68   : > { %v1877_v8 = vmul.f32 %v3213_v7, %v3211_v4 }
 0xf6a   : > { %v1878_v11 = vpack.c.bf16 %v1877_v8, %v1877_v8 }
 0xf6c   : > { %3042 = vmatmul.mubr.msk.bf16.vlgmr.msra.gmra.mxu1 %vm924_vm4, %v1878_v11 }
 0xf6d   : > { %3054 = vmatpush3.bf16.msra.mxu1 %v3184_v10  ;;  %3057 = vmatprep.mubr.msk.bf16.mxu1 %vm3287_vm1, %v3286_v9 }
 0xf6e   : > { %3055 = vmatprep.subr.bf16.mxu1 %v3286_v9 }
 0xf71   : > { %3056 = vmatpush3.bf16.msra.mxu1 %v3185_v12  ;;  %v2795_v12 = vld [vmem:[%s3895_s12 + $0x1] ss:$0 sm:$0xff] }
 0xf72   : > { %3069 = vmatprep.subr.bf16.mxu1 %v3286_v9 }
 0xf74   : > { %3058 = vmatmul.mubr.msk.bf16.vlgmr.msra.gmra.mxu1 %vm647_vm0, %v3685_v17 }
 0xf75   : > { %3071 = vmatprep.mubr.msk.bf16.mxu1 %vm3287_vm1, %v3286_v9 }
0x102c   : > { %v1920_v13 = vpop.f32.mrf.mxu1 }
0x102d   : > { %v1926_v45 = vpack.c.bf16 %v1920_v13, %v1920_v13 }
0x102e   : > { %v3043_v14 = vpop.f32.mrf.mxu1 }
0x102f   : > { %v2796_v14 = vld [vmem:[%s3896_s13 + $0x1] ss:$0 sm:$0xff] }
0x1030   : > { %v1923_v16 = vpop.f32.mrf.mxu1 }
0x1032   : > { %v3044_v18 = vpop.f32.mrf.mxu1 }
0x1034   : > { %v2054_v21 = vpop.f32.mrf.mxu1 }
0x1035   : > { %v2055_v20 = vadd.f32 %v2770_v19, %v2054_v21  ;;  %v3190_v21 = vld [vmem:[%s3899_s16 + $0x38] sm:$0xff]  }
0x1036   : > { %v3059_v23 = vpop.f32.mrf.mxu1 }
0x1037   : > { %v2126_v24 = vpack.c.bf16 %v2055_v20, %v2055_v20  ;;  %v3191_v20 = vld [vmem:[%s3899_s16 + $0x30] sm:$0xff]   ;;  %v3192_v23 = vld [vmem:[%s3899_s16 + $0x28] sm:$0xff]  }
0x1038   : > { %v2057_v17 = vpop.f32.mrf.mxu1 }
0x1039   : > { %v2131_v26 = vsel %vm877_vm3, %v2126_v24, 0  ;;  %v3193_v24 = vld [vmem:[%s3899_s16 + $0x20] sm:$0xff]  }
0x103a   : > { %v3060_v27 = vpop.f32.mrf.mxu1  ;;  %3070 = vmatpush3.bf16.xpose.msra.mxu1 %v2131_v26 }
0x103b   : > { %3081 = vmatprep.subr.bf16.mxu1 %v3286_v9 }
0x1041   : > { %3072 = vmatmul.mubr.msk.bf16.vlgmr.msra.gmra.mxu1 %vm877_vm3, %v2125_v29 }
0x1042   : > { %3083 = vmatprep.mubr.msk.bf16.mxu1 %vm3287_vm1, %v3286_v9  ;;  %3082 = vmatpush3.bf16.msra.mxu1 %v3187_v40 }
0x1043   : > { %3093 = vmatprep.subr.bf16.mxu1 %v3286_v9 }
0x1101   : > { %v2167_v30 = vpop.f32.mrf.mxu1 }
0x1102   : > { %v2168_v31 = vadd.f32 %v2167_v30, %v3550_v58 }
0x1103   : > { %v3073_v32 = vpop.f32.mrf.mxu1 }
0x1104   : > { %v2173_v33 = vsel %vm924_vm4, %v2168_v31, -inf }
0x1105   : > { %2174 = vmax.xlane.f32.xlu0 %v2173_v33  ;;  %v2170_v34 = vpop.f32.mrf.mxu1 }
0x1107   : > { %v3074_v35 = vpop.f32.mrf.mxu1 }
0x118e   : > { %v2175_v36 = vpop.xlane.xlu0 %2174 }
0x118f   : > { %v2176_v22 = vsub.f32 %v2168_v31, %v2175_v36 }
0x1191   : > { %v2177_v37 = vmul.f32 1.442695, %v2176_v22 }
0x1193   : > { %3214 = vpow2.f32 %v2177_v37 }
0x11a0   : > { %v3215_v38 = vpop.eup %3214 }
0x11a1   : > { %v2179_v39 = vsel %vm924_vm4, %v3215_v38, 0.0 }
0x11a2   : > { %2180 = vadd.xlane.f32.xlu1 %v2179_v39 }
0x122b   : > { %v2181_v58 = vpop.xlane.xlu1 %2180 }
0x122c   : > { %3216 = vrcp.f32 %v2181_v58 }
0x1239   : > { %v3217_v41 = vpop.eup %3216 }
0x123a   : > { %v2183_v42 = vmul.f32 %v3217_v41, %v3215_v38  ;;  %v2815_v38 = vld [vmem:[%s3900_s17 + $0x1] ss:$0 sm:$0xff] }
0x123c   : > { %v2184_v44 = vpack.c.bf16 %v2183_v42, %v2183_v42 }
0x123e   : > { %3078 = vmatmul.mubr.msk.bf16.vlgmr.msra.gmra.mxu0 %vm924_vm4, %v2184_v44 }
0x123f   : > { %3088 = vmatpush3.bf16.msra.mxu0 %v3186_v43  ;;  %3089 = vmatprep.mubr.msk.bf16.mxu0 %vm3287_vm1, %v3286_v9 }
0x1240   : > { %3101 = vmatprep.subr.bf16.mxu0 %v3286_v9 }
0x1246   : > { %3090 = vmatmul.mubr.msk.bf16.vlgmr.msra.gmra.mxu0 %vm877_vm3, %v1926_v45 }
0x1247   : > { %3109 = vmatprep.mubr.msk.bf16.mxu0 %vm3287_vm1, %v3286_v9  ;;  %3102 = vmatpush3.bf16.msra.mxu0 %v3190_v21 }
0x1248   : > { %3103 = vmatprep.subr.bf16.mxu0 %v3286_v9 }
0x124b   : > { %3104 = vmatpush3.bf16.msra.mxu0 %v3191_v20 }
0x124c   : > { %3105 = vmatprep.subr.bf16.mxu0 %v3286_v9 }
0x124f   : > { %3106 = vmatpush3.bf16.msra.mxu0 %v3192_v23 }
0x1250   : > { %3107 = vmatprep.subr.bf16.mxu0 %v3286_v9 }
0x1253   : > { %3108 = vmatpush3.bf16.msra.mxu0 %v3193_v24 }
0x12fe   : > { %v2226_v46 = vpop.f32.mrf.mxu0 }
0x12ff   : > { %v2232_v47 = vpack.c.bf16 %v2226_v46, %v2226_v46 }
0x1300   : > { %v3079_v48 = vpop.f32.mrf.mxu0 }
0x1301   : > { %3084 = vmatmul.mubr.msk.bf16.vlgmr.msra.gmra.mxu1 %vm877_vm3, %v2232_v47 }
0x1302   : > { %v2229_v49 = vpop.f32.mrf.mxu0  ;;  %3097 = vmatprep.mubr.msk.bf16.mxu1 %vm3287_vm1, %v3286_v9  ;;  %3094 = vmatpush3.bf16.msra.mxu1 %v3188_v6 }
0x1303   : > { %3095 = vmatprep.subr.bf16.mxu1 %v3286_v9 }
0x1304   : > { %v3080_v50 = vpop.f32.mrf.mxu0 }
0x1306   : > { %v2328_v51 = vpop.f32.mrf.mxu0 }
0x1308   : > { %v3091_v52 = vpop.f32.mrf.mxu0 }
0x130a   : > { %v2331_v53 = vpop.f32.mrf.mxu0 }
0x130c   : > { %v3092_v54 = vpop.f32.mrf.mxu0 }
0x130d   : > { %v2823_v54 = vld [vmem:[%s3901_s18 + $0x1] ss:$0 sm:$0xff] }
0x13c1   : > { %v2279_v55 = vpop.f32.mrf.mxu1 }
0x13c2   : > { %v2329_v57 = vadd.f32 %v2328_v51, %v2279_v55 }
0x13c3   : > { %v3085_v59 = vpop.f32.mrf.mxu1 }
0x13c4   : > { %v2342_v60 = vadd.f32 %v2792_v56, %v2329_v57  ;;  %v2824_v56 = vld [vmem:[%s3902_s19 + $0x1] ss:$0 sm:$0xff] }
0x13c5   : > { %v2282_v61 = vpop.f32.mrf.mxu1 }
0x13c6   : > { %v2343_v62 = vadd.f32 %v2342_v60, %v3678_v15  ;;  %v3189_v15 = vld [vmem:[%s3897_s14 + $0x10] sm:$0xff]  }
0x13c7   : > { %v3086_v63 = vpop.f32.mrf.mxu1  ;;  %3096 = vmatpush3.bf16.msra.mxu1 %v3189_v15 }
0x13c8   : > { %v2348_v0 = vsel %vm647_vm0, %v2343_v62, 0.0 }
0x13c9   : > { %2349 = vadd.xlane.f32.xlu0 %v2348_v0 }
0x1452   : > { %v2350_v1 = vpop.xlane.xlu0 %2349 }
0x1453   : > { %v2351_v2 = vmul.f32 0.03125, %v2350_v1 }
0x1455   : > { %v2352_v3 = vsub.f32 %v2343_v62, %v2351_v2 }
0x1457   : > { %v2353_v4 = vmul.f32 %v2352_v3, %v2352_v3 }
0x1459   : > { %v2354_v5 = vsel %vm647_vm0, %v2353_v4, 0.0 }
0x145a   : > { %2355 = vadd.xlane.f32.xlu1 %v2354_v5 }
0x14e3   : > { %v2356_v7 = vpop.xlane.xlu1 %2355 }
0x14e4   : > { %v2357_v8 = vmul.f32 0.03125, %v2356_v7 }
0x14e6   : > { %v2358_v10 = vadd.f32 1e-12, %v2357_v8 }
0x14e8   : > { %3218 = vrsqrt.f32 %v2358_v10 }
0x14f5   : > { %v3219_v11 = vpop.eup %3218 }
0x14f6   : > { %v2360_v13 = vmul.f32 %v3219_v11, %v2352_v3 }
0x14f8   : > { %v2367_v16 = vmul.f32 %v2795_v12, %v2360_v13 }
0x14fa   : > { %v2374_v18 = vadd.f32 %v2796_v14, %v2367_v16 }
0x14fc   : > { %v2375_v19 = vpack.c.bf16 %v2374_v18, %v2374_v18 }
0x14fe   : > { %3098 = vmatmul.mubr.msk.bf16.vlgmr.msra.gmra.mxu1 %vm647_vm0, %v2375_v19 }
0x15be   : > { %v2438_v17 = vpop.f32.mrf.mxu1 }
0x15bf   : > { %v2439_v26 = vadd.f32 %v2802_v25, %v2438_v17 }
0x15c0   : > { %v3099_v27 = vpop.f32.mrf.mxu1 }
0x15c1   : > { %v2444_v28 = vmul.f32 %v2439_v26, %v2439_v26 }
0x15c2   : > { %v2441_v29 = vpop.f32.mrf.mxu1 }
0x15c3   : > { %v2445_v30 = vmul.f32 %v2444_v28, %v2439_v26 }
0x15c4   : > { %v3100_v31 = vpop.f32.mrf.mxu1 }
0x15c5   : > { %v2446_v32 = vmul.f32 0.044715, %v2445_v30 }
0x15c7   : > { %v2447_v33 = vadd.f32 %v2446_v32, %v2439_v26 }
0x15c9   : > { %v2448_v34 = vmul.f32 0.7978846, %v2447_v33 }
0x15cb   : > { %3220 = vtanh.f32 %v2448_v34 }
0x15d8   : > { %v3221_v9 = vpop.eup %3220 }
0x15d9   : > { %v2450_v35 = vadd.f32 1.0, %v3221_v9 }
0x15db   : > { %v2451_v36 = vmul.f32 0.5, %v2450_v35 }
0x15dd   : > { %v2452_v22 = vmul.f32 %v2451_v36, %v2439_v26 }
0x15df   : > { %v2453_v37 = vpack.c.bf16 %v2452_v22, %v2452_v22 }
0x15e1   : > { %3110 = vmatmul.mubr.msk.bf16.vlgmr.msra.gmra.mxu0 %vm1546_vm5, %v2453_v37 }
0x16a1   : > { %v2532_v39 = vpop.f32.mrf.mxu0 }
0x16a2   : > { %v2533_v40 = vadd.f32 %v2815_v38, %v2532_v39 }
0x16a3   : > { %v3111_v58 = vpop.f32.mrf.mxu0 }
0x16a4   : > { %v2538_v41 = vadd.f32 %v2533_v40, %v2374_v18 }
0x16a5   : > { %v2535_v42 = vpop.f32.mrf.mxu0 }
0x16a6   : > { %v2543_v43 = vsel %vm647_vm0, %v2538_v41, 0.0 }
0x16a7   : > { %2544 = vadd.xlane.f32.xlu0 %v2543_v43  ;;  %v3112_v44 = vpop.f32.mrf.mxu0 }
0x1730   : > { %v2545_v45 = vpop.xlane.xlu0 %2544 }
0x1731   : > { %v2546_v46 = vmul.f32 0.03125, %v2545_v45 }
0x1733   : > { %v2547_v47 = vsub.f32 %v2538_v41, %v2546_v46 }
0x1735   : > { %v2548_v48 = vmul.f32 %v2547_v47, %v2547_v47 }
0x1737   : > { %v2549_v49 = vsel %vm647_vm0, %v2548_v48, 0.0 }
0x1738   : > { %2550 = vadd.xlane.f32.xlu1 %v2549_v49 }
0x17c1   : > { %v2551_v50 = vpop.xlane.xlu1 %2550 }
0x17c2   : > { %v2552_v51 = vmul.f32 0.03125, %v2551_v50 }
0x17c4   : > { %v2553_v52 = vadd.f32 1e-12, %v2552_v51 }
0x17c6   : > { %3222 = vrsqrt.f32 %v2553_v52 }
0x17d3   : > { %v3223_v53 = vpop.eup %3222 }
0x17d4   : > { %v2555_v55 = vmul.f32 %v3223_v53, %v2547_v47 }
0x17d6   : > { %v2562_v57 = vmul.f32 %v2823_v54, %v2555_v55 }
0x17d8   : > { %v2569_v59 = vadd.f32 %v2824_v56, %v2562_v57 }
0x17da   : > { %2570 = vst.msk [vmem:[%s631_s1] sm:$0xff] %vm647_vm0, %v2569_v59 }
0x17db   : > { %3237 = shalt.err (!%p3234_p3)
}
0x17dc   : > { %s3238_s3 = scalar_lea.hbm %s2583_s5, 128  ;;  %s3242_s23 = scalar_lea.hbm %s3903_s20, 256 }
0x17dd   : > { %p3239_p4 = scmp.ne.s32.totalorder %s2583_s5, %s3238_s3  ;;  %p3243_p9 = scmp.lt.s32.totalorder %s2583_s5, %s3903_s20 }
0x17de   : > { %p3244_p10 = scmp.lt.s32.totalorder %s3242_s23, %s3238_s3 }
0x17df   : > { %p3240_p7 = pnand %p3239_p4, %p3432_p5 }
0x17e0   : > { %p3245_p11 = por %p3244_p10, %p3243_p9 }
0x17e1   : > { %p3241_p8 = pneg %p3240_p7 }
0x17e3   : > { %p3246_p12 = pnand %p3245_p11, %p3241_p8 }
0x17e5   : > { %3249 = shalt.err (!%p3246_p12)
}
0x17e6   : > { %3113 = dma.vmem_to_hbm [thread:$0]  (%p3432_p5), %s2586_s30, 128, %s2583_s5, %s2572_s6  }
0x17e7 PF: > { %s3932_s29 = sld [smem:[#allocation5_spill]]  ;;  %p3119_p13 = scmp.ge.s32.totalorder %s3284_s24, 2 }
0x17e9   : > { %p3116_p0 = pnand %p3119_p13, %p3436_p6 }
0x17eb   : > { %p3117_p1 = pneg %p3116_p0 }
0x17ed   : > { %s2597_s0 = sand.u32 1, %s3932_s29  }
0x17ee   : > { %s2598_s21 = scalar_lea.sflag [#allocation3], %s2597_s0 }
0x17ef   : > { %3267 = dma.done.wait (%p3117_p1), %s2598_s21, 128  }
0x17f0   : > { %3269 = vsyncadd (%p3117_p1), %s2598_s21, 4294967168  ;;  %s3934_s24 = sld [smem:[#allocation7_spill]]  ;;  %s3937_s1 = smov %s3276_s22 }
0x17f1   : > { %s3935_s2 = sld [smem:[#allocation6_spill]] }
0x17f2   : > { %s3936_s23 = sld [smem:[#allocation8_spill]] }
0x17f6   : > { %p30_p2 = scmp.ge.s32.totalorder %s3934_s24, 4  }
0x17f7   : > { %s3938_s22 = smov %s3935_s2 }
0x17f8   :  { %32 = sbr.rel (!%p30_p2) target bundleno = 11 (0xb), region = 168 }
0x17fd   :  { %2603 = vsyncpa [#allocation3], 1 }
0x17fe   :  { %2605 = vsyncpa [#allocation3 + $0x1], 1 }

</bundles_post_ra>
